<compile_context>
chip_gen: v6e
topology: v6e:2x2x1
jax: 0.10.0
libtpu: 0.0.40
codegen_flags: <defaults>
</compile_context>

<pallas_src>
import jax
import jax.numpy as jnp
from jax import lax
from jax.experimental import pallas as pl
from jax.experimental.pallas import tpu as pltpu


def _ldmk_kernel(x_ref, w_ref, shift_ref, o_ref, xpad_ref, xcat_ref):
    """One grid step: Nb images of an NHWC feature map.

    x_ref    : (Nb, H, W, C)        unpadded NHWC input block (compute dtype)
    w_ref    : (9*C, F)             im2col weights, BN scale folded in,
                                    Cout zero-padded to F=128 (lane-dense)
    shift_ref: (1, F)               f32 BN shift (zero in the pad lanes)
    o_ref    : (Nb, H*W, F)         lane-dense output block
    xpad_ref : (Nb, H+2, Wp, C)     VMEM scratch, zero-halo padded input
    xcat_ref : (Nb, H, W, 9*C)      VMEM scratch, im2col gather
    """
    Nb, H, W, C = x_ref.shape
    F = w_ref.shape[1]
    Wp = xpad_ref.shape[2]
    rows = Nb * H * W

    # --- halo-only zeroing (re-done every step: correct under v7x megacore
    # "parallel" sharding where a core's first step has program_id != 0).
    # Columns >= W+2 of the scratch are never read, so they are not zeroed.
    zrow = jnp.zeros((Nb, 1, Wp, C), xpad_ref.dtype)
    xpad_ref[:, 0:1, :, :] = zrow
    xpad_ref[:, H + 1:H + 2, :, :] = zrow
    zcol = jnp.zeros((Nb, H + 2, 1, C), xpad_ref.dtype)
    xpad_ref[:, :, 0:1, :] = zcol
    xpad_ref[:, :, W + 1:W + 2, :] = zcol
    # interior copy
    xpad_ref[:, 1:H + 1, 1:W + 1, :] = x_ref[...]

    # --- im2col gather: 9 shifted (Nb,H,W,C) windows, channel-concatenated.
    # C is a multiple of 128 for this head, so every destination lane slice
    # is lane-tile aligned.
    for t in range(9):
        ky, kx = divmod(t, 3)
        xcat_ref[:, :, :, t * C:(t + 1) * C] = \
            xpad_ref[:, ky:ky + H, kx:kx + W, :]

    # --- single K = 9*C matmul on the MXU, f32 accumulation, then BN shift.
    lhs = xcat_ref[...].reshape(rows, 9 * C)
    acc = jnp.dot(lhs, w_ref[...], preferred_element_type=jnp.float32)
    acc = acc + shift_ref[...]                      # (rows,F) + (1,F)

    o_ref[...] = acc.reshape(Nb, H * W, F).astype(o_ref.dtype)


def _fold_and_pack(w_oihw, bn, C, F, eps, compute_dtype):
    """Fold BN scale into the conv weights, repack as an im2col (9*C, F) slab
    (Cout zero-padded to F); keep the BN shift separate in f32."""
    Cout = w_oihw.shape[0]
    scale = bn["gamma"] / jnp.sqrt(bn["var"] + eps)            # (Cout,)
    shift = bn["beta"] - bn["mean"] * scale                    # (Cout,)
    # OIHW -> (ky, kx, C, Cout) -> (9*C, Cout); K index = (ky*3+kx)*C + c.
    w_mat = jnp.transpose(w_oihw, (2, 3, 1, 0)).reshape(9 * C, Cout)
    w_mat = w_mat * scale[None, :]                             # fold in f32
    w_pad = jnp.zeros((9 * C, F), compute_dtype)
    w_pad = w_pad.at[:, :Cout].set(w_mat.astype(compute_dtype))
    shift_pad = jnp.zeros((1, F), jnp.float32)
    shift_pad = shift_pad.at[0, :Cout].set(shift.astype(jnp.float32))
    return w_pad, shift_pad


def ldmk_head_pallas(x_nchw, w_oihw, bn, *, eps=1e-5,
                     compute_dtype=jnp.bfloat16, out_dtype=jnp.float32):
    """One LdmkLayer head: conv3x3(pad=1, no bias) + inference BatchNorm +
    permute/view.  Returns (N, H*W, Cout)."""
    N, C, H, W = x_nchw.shape
    Cout = w_oihw.shape[0]
    F = 128                                    # lane-dense padded Cout
    Wp = ((W + 2 + 7) // 8) * 8                # padded-input scratch width

    # Layout glue (plain JAX): NCHW -> NHWC, bf16 cast for native MXU rate.
    x_nhwc = jnp.transpose(x_nchw, (0, 2, 3, 1)).astype(compute_dtype)
    w_pad, shift_pad = _fold_and_pack(w_oihw, bn, C, F, eps, compute_dtype)

    cbytes = jnp.dtype(compute_dtype).itemsize
    obytes = jnp.dtype(out_dtype).itemsize

    def step_bytes(nb):
        xb = nb * H * W * C * cbytes                 # input block
        ob = nb * H * W * F * obytes                 # output block
        wb = 9 * C * F * cbytes + F * 4              # weights + shift
        xpad = nb * (H + 2) * Wp * C * cbytes        # scratch
        xcat = nb * H * W * 9 * C * cbytes           # scratch
        return 2 * (xb + ob + wb) + xpad + xcat      # 2x: pipeline buffers

    # Batch block: big enough to amortize per-step overhead on single-core
    # v5e/v6e, but keep >=2 parallel grid steps (v7x: 2 TCs) and stay well
    # under v7x's 64 MiB per-core VMEM.
    budget = 24 * 1024 * 1024
    divs = [d for d in range(1, N + 1) if N % d == 0]
    fitting = [d for d in divs if step_bytes(d) <= budget] or [1]
    multi = [d for d in fitting if N // d >= 2]
    pool = multi if multi else fitting
    big = [d for d in pool if d * H * W >= 512]
    nb = min(big) if big else max(pool)

    grid = (N // nb,)
    vmem_limit = int(min(64 * 1024 * 1024,
                         max(32 * 1024 * 1024, 2 * step_bytes(nb))))

    out = pl.pallas_call(
        _ldmk_kernel,
        out_shape=jax.ShapeDtypeStruct((N, H * W, F), out_dtype),
        grid_spec=pltpu.PrefetchScalarGridSpec(
            num_scalar_prefetch=0,
            grid=grid,
            in_specs=[
                pl.BlockSpec((nb, H, W, C), lambda b: (b, 0, 0, 0)),
                pl.BlockSpec((9 * C, F), lambda b: (0, 0)),
                pl.BlockSpec((1, F), lambda b: (0, 0)),
            ],
            out_specs=pl.BlockSpec((nb, H * W, F), lambda b: (b, 0, 0)),
            scratch_shapes=[
                pltpu.VMEM((nb, H + 2, Wp, C), compute_dtype),
                pltpu.VMEM((nb, H, W, 9 * C), compute_dtype),
            ],
        ),
        compiler_params=pltpu.CompilerParams(
            dimension_semantics=("parallel",),
            vmem_limit_bytes=vmem_limit),
    )(x_nhwc, w_pad, shift_pad)

    return out[:, :, :Cout]                    # drop the lane padding


def ldmk_layer_pallas(xs, ws, bns, *, eps=1e-5,
                      compute_dtype=jnp.bfloat16, out_dtype=jnp.float32):
    """LdmkLayer.forward: per-level head, then concat along the anchor axis."""
    # TODO(synk): fuse all FPN levels into one pallas_call writing straight
    # into the concatenated output (default config has a single level, so the
    # per-level launch overhead does not apply here).
    outs = [ldmk_head_pallas(x, w, bn, eps=eps, compute_dtype=compute_dtype,
                             out_dtype=out_dtype)
            for x, w, bn in zip(xs, ws, bns)]
    return jnp.concatenate(outs, axis=1)


def _reference_f32(xs, ws, bns, eps=1e-5):
    """Exact f32 math of the PyTorch module (inference-mode BatchNorm)."""
    outs = []
    for x, w, bn in zip(xs, ws, bns):
        y = lax.conv_general_dilated(
            x, w, window_strides=(1, 1), padding=((1, 1), (1, 1)),
            dimension_numbers=("NCHW", "OIHW", "NCHW"))
        scale = bn["gamma"] / jnp.sqrt(bn["var"] + eps)
        shift = bn["beta"] - bn["mean"] * scale
        y = y * scale[None, :, None, None] + shift[None, :, None, None]
        n, co, h, w_ = y.shape
        outs.append(jnp.transpose(y, (0, 2, 3, 1)).reshape(n, h * w_, co))
    return jnp.concatenate(outs, axis=1)


def _reference_matched(xs, ws, bns, eps=1e-5, compute_dtype=jnp.bfloat16):
    """Mirrors the kernel numerics: BN scale folded into compute-dtype
    weights, compute-dtype activations, f32 accumulation, f32 shift."""
    outs = []
    for x, w, bn in zip(xs, ws, bns):
        scale = bn["gamma"] / jnp.sqrt(bn["var"] + eps)
        shift = bn["beta"] - bn["mean"] * scale
        wf = (w * scale[:, None, None, None]).astype(compute_dtype)
        y = lax.conv_general_dilated(
            x.astype(compute_dtype), wf, window_strides=(1, 1),
            padding=((1, 1), (1, 1)),
            dimension_numbers=("NCHW", "OIHW", "NCHW"),
            preferred_element_type=jnp.float32)
        y = y + shift[None, :, None, None]
        n, co, h, w_ = y.shape
        outs.append(jnp.transpose(y, (0, 2, 3, 1)).reshape(n, h * w_, co))
    return jnp.concatenate(outs, axis=1)


if __name__ == "__main__":
    # LdmkLayer(in_planes=[128]), num_anchors=[1]  ->  Cout = 1 * 10 = 10
    N, C, H, W = 2, 128, 8, 8
    Cout = 10

    key = jax.random.PRNGKey(0)
    ks = jax.random.split(key, 6)
    x = jax.random.normal(ks[0], (N, C, H, W), jnp.float32)
    w = jax.random.normal(ks[1], (Cout, C, 3, 3), jnp.float32) * 0.05
    bn = {
        "gamma": 1.0 + 0.1 * jax.random.normal(ks[2], (Cout,), jnp.float32),
        "beta": 0.1 * jax.random.normal(ks[3], (Cout,), jnp.float32),
        "mean": 0.1 * jax.random.normal(ks[4], (Cout,), jnp.float32),
        "var": jnp.abs(jax.random.normal(ks[5], (Cout,), jnp.float32)) + 0.5,
    }
    # TODO(synk): BatchNorm is implemented in inference mode (running stats);
    # torch training-mode batch statistics are not reproduced.

    ldmk = ldmk_layer_pallas([x], [w], [bn])        # bf16 compute, f32 accum
    jax.block_until_ready(ldmk)

    assert ldmk.shape == (N, H * W, Cout)
    # dtype-matched check (same bf16 products, f32 accumulation): tight.
    ref_bf16 = _reference_matched([x], [w], [bn])
    assert jnp.allclose(ldmk, ref_bf16, atol=5e-3, rtol=5e-3)
    # semantic sanity vs exact f32 module math: bf16-rounding tolerance.
    ref_f32 = _reference_f32([x], [w], [bn])
    assert jnp.allclose(ldmk, ref_f32, atol=7e-2, rtol=7e-2)

    print("KERNEL_OK")
</pallas_src>

<mosaic_0001>
module attributes {stable_mosaic.version = 11 : i64} {
  func.func @_ldmk_kernel(%arg0: i32, %arg1: memref<1x8x8x128xbf16, #tpu.memory_space<vmem>>, %arg2: memref<1152x128xbf16, #tpu.memory_space<vmem>>, %arg3: memref<1x128xf32, #tpu.memory_space<vmem>>, %arg4: memref<1x64x128xf32, #tpu.memory_space<vmem>>, %arg5: memref<1x10x16x128xbf16, #tpu.memory_space<vmem>>, %arg6: memref<1x8x8x1152xbf16, #tpu.memory_space<vmem>>) attributes {dimension_semantics = [#tpu.dimension_semantics<parallel>], iteration_bounds = array<i64: 2>, scalar_prefetch = 0 : i64, scratch_operands = 2 : i64, tpu.core_type = #tpu.core_type<tc>, window_params = [{transform_indices = @transform_0, window_bounds = array<i64: 1, 8, 8, 128>}, {pipeline_mode = #tpu.pipeline_mode<synchronous>, transform_indices = @transform_1, window_bounds = array<i64: 1152, 128>}, {pipeline_mode = #tpu.pipeline_mode<synchronous>, transform_indices = @transform_2, window_bounds = array<i64: 1, 128>}, {transform_indices = @transform_3, window_bounds = array<i64: 1, 64, 128>}]} {
    %cst = arith.constant 0.000000e+00 : bf16
    %0 = vector.broadcast %cst : bf16 to vector<1x1x16x128xbf16>
    %c0 = arith.constant 0 : index
    %c0_0 = arith.constant 0 : index
    %c0_1 = arith.constant 0 : index
    %c0_2 = arith.constant 0 : index
    %1 = vector.load %arg5[%c0, %c0_0, %c0_1, %c0_2] : memref<1x10x16x128xbf16, #tpu.memory_space<vmem>>, vector<1x1x16x128xbf16>
    tpu.vector_store %arg5[%c0, %c0_0, %c0_1, %c0_2], %0 {strides = array<i32>} : memref<1x10x16x128xbf16, #tpu.memory_space<vmem>>, vector<1x1x16x128xbf16>,
    %c0_3 = arith.constant 0 : index
    %c9 = arith.constant 9 : index
    %c0_4 = arith.constant 0 : index
    %c0_5 = arith.constant 0 : index
    %2 = vector.load %arg5[%c0_3, %c9, %c0_4, %c0_5] : memref<1x10x16x128xbf16, #tpu.memory_space<vmem>>, vector<1x1x16x128xbf16>
    tpu.vector_store %arg5[%c0_3, %c9, %c0_4, %c0_5], %0 {strides = array<i32>} : memref<1x10x16x128xbf16, #tpu.memory_space<vmem>>, vector<1x1x16x128xbf16>,
    %cst_6 = arith.constant 0.000000e+00 : bf16
    %3 = vector.broadcast %cst_6 : bf16 to vector<1x10x1x128xbf16>
    %c0_7 = arith.constant 0 : index
    %c0_8 = arith.constant 0 : index
    %c0_9 = arith.constant 0 : index
    %c0_10 = arith.constant 0 : index
    %4 = vector.load %arg5[%c0_7, %c0_8, %c0_9, %c0_10] : memref<1x10x16x128xbf16, #tpu.memory_space<vmem>>, vector<1x10x1x128xbf16>
    tpu.vector_store %arg5[%c0_7, %c0_8, %c0_9, %c0_10], %3 {strides = array<i32>} : memref<1x10x16x128xbf16, #tpu.memory_space<vmem>>, vector<1x10x1x128xbf16>,
    %c0_11 = arith.constant 0 : index
    %c0_12 = arith.constant 0 : index
    %c9_13 = arith.constant 9 : index
    %c0_14 = arith.constant 0 : index
    %5 = vector.load %arg5[%c0_11, %c0_12, %c9_13, %c0_14] : memref<1x10x16x128xbf16, #tpu.memory_space<vmem>>, vector<1x10x1x128xbf16>
    tpu.vector_store %arg5[%c0_11, %c0_12, %c9_13, %c0_14], %3 {strides = array<i32>} : memref<1x10x16x128xbf16, #tpu.memory_space<vmem>>, vector<1x10x1x128xbf16>,
    %c0_15 = arith.constant 0 : index
    %c0_16 = arith.constant 0 : index
    %c0_17 = arith.constant 0 : index
    %c0_18 = arith.constant 0 : index
    %6 = vector.load %arg1[%c0_15, %c0_16, %c0_17, %c0_18] : memref<1x8x8x128xbf16, #tpu.memory_space<vmem>>, vector<1x8x8x128xbf16>
    %c0_19 = arith.constant 0 : index
    %c1 = arith.constant 1 : index
    %c1_20 = arith.constant 1 : index
    %c0_21 = arith.constant 0 : index
    %7 = vector.load %arg5[%c0_19, %c1, %c1_20, %c0_21] : memref<1x10x16x128xbf16, #tpu.memory_space<vmem>>, vector<1x8x8x128xbf16>
    tpu.vector_store %arg5[%c0_19, %c1, %c1_20, %c0_21], %6 {strides = array<i32>} : memref<1x10x16x128xbf16, #tpu.memory_space<vmem>>, vector<1x8x8x128xbf16>,
    %c0_22 = arith.constant 0 : index
    %c0_23 = arith.constant 0 : index
    %c0_24 = arith.constant 0 : index
    %c0_25 = arith.constant 0 : index
    %8 = vector.load %arg5[%c0_22, %c0_23, %c0_24, %c0_25] : memref<1x10x16x128xbf16, #tpu.memory_space<vmem>>, vector<1x8x8x128xbf16>
    %c0_26 = arith.constant 0 : index
    %c0_27 = arith.constant 0 : index
    %c0_28 = arith.constant 0 : index
    %c0_29 = arith.constant 0 : index
    %9 = vector.load %arg6[%c0_26, %c0_27, %c0_28, %c0_29] : memref<1x8x8x1152xbf16, #tpu.memory_space<vmem>>, vector<1x8x8x128xbf16>
    tpu.vector_store %arg6[%c0_26, %c0_27, %c0_28, %c0_29], %8 {strides = array<i32>} : memref<1x8x8x1152xbf16, #tpu.memory_space<vmem>>, vector<1x8x8x128xbf16>,
    %c0_30 = arith.constant 0 : index
    %c0_31 = arith.constant 0 : index
    %c1_32 = arith.constant 1 : index
    %c0_33 = arith.constant 0 : index
    %10 = vector.load %arg5[%c0_30, %c0_31, %c1_32, %c0_33] : memref<1x10x16x128xbf16, #tpu.memory_space<vmem>>, vector<1x8x8x128xbf16>
    %c0_34 = arith.constant 0 : index
    %c0_35 = arith.constant 0 : index
    %c0_36 = arith.constant 0 : index
    %c128 = arith.constant 128 : index
    %11 = vector.load %arg6[%c0_34, %c0_35, %c0_36, %c128] : memref<1x8x8x1152xbf16, #tpu.memory_space<vmem>>, vector<1x8x8x128xbf16>
    tpu.vector_store %arg6[%c0_34, %c0_35, %c0_36, %c128], %10 {strides = array<i32>} : memref<1x8x8x1152xbf16, #tpu.memory_space<vmem>>, vector<1x8x8x128xbf16>,
    %c0_37 = arith.constant 0 : index
    %c0_38 = arith.constant 0 : index
    %c2 = arith.constant 2 : index
    %c0_39 = arith.constant 0 : index
    %12 = vector.load %arg5[%c0_37, %c0_38, %c2, %c0_39] : memref<1x10x16x128xbf16, #tpu.memory_space<vmem>>, vector<1x8x8x128xbf16>
    %c0_40 = arith.constant 0 : index
    %c0_41 = arith.constant 0 : index
    %c0_42 = arith.constant 0 : index
    %c256 = arith.constant 256 : index
    %13 = vector.load %arg6[%c0_40, %c0_41, %c0_42, %c256] : memref<1x8x8x1152xbf16, #tpu.memory_space<vmem>>, vector<1x8x8x128xbf16>
    tpu.vector_store %arg6[%c0_40, %c0_41, %c0_42, %c256], %12 {strides = array<i32>} : memref<1x8x8x1152xbf16, #tpu.memory_space<vmem>>, vector<1x8x8x128xbf16>,
    %c0_43 = arith.constant 0 : index
    %c1_44 = arith.constant 1 : index
    %c0_45 = arith.constant 0 : index
    %c0_46 = arith.constant 0 : index
    %14 = vector.load %arg5[%c0_43, %c1_44, %c0_45, %c0_46] : memref<1x10x16x128xbf16, #tpu.memory_space<vmem>>, vector<1x8x8x128xbf16>
    %c0_47 = arith.constant 0 : index
    %c0_48 = arith.constant 0 : index
    %c0_49 = arith.constant 0 : index
    %c384 = arith.constant 384 : index
    %15 = vector.load %arg6[%c0_47, %c0_48, %c0_49, %c384] : memref<1x8x8x1152xbf16, #tpu.memory_space<vmem>>, vector<1x8x8x128xbf16>
    tpu.vector_store %arg6[%c0_47, %c0_48, %c0_49, %c384], %14 {strides = array<i32>} : memref<1x8x8x1152xbf16, #tpu.memory_space<vmem>>, vector<1x8x8x128xbf16>,
    %c0_50 = arith.constant 0 : index
    %c1_51 = arith.constant 1 : index
    %c1_52 = arith.constant 1 : index
    %c0_53 = arith.constant 0 : index
    %16 = vector.load %arg5[%c0_50, %c1_51, %c1_52, %c0_53] : memref<1x10x16x128xbf16, #tpu.memory_space<vmem>>, vector<1x8x8x128xbf16>
    %c0_54 = arith.constant 0 : index
    %c0_55 = arith.constant 0 : index
    %c0_56 = arith.constant 0 : index
    %c512 = arith.constant 512 : index
    %17 = vector.load %arg6[%c0_54, %c0_55, %c0_56, %c512] : memref<1x8x8x1152xbf16, #tpu.memory_space<vmem>>, vector<1x8x8x128xbf16>
    tpu.vector_store %arg6[%c0_54, %c0_55, %c0_56, %c512], %16 {strides = array<i32>} : memref<1x8x8x1152xbf16, #tpu.memory_space<vmem>>, vector<1x8x8x128xbf16>,
    %c0_57 = arith.constant 0 : index
    %c1_58 = arith.constant 1 : index
    %c2_59 = arith.constant 2 : index
    %c0_60 = arith.constant 0 : index
    %18 = vector.load %arg5[%c0_57, %c1_58, %c2_59, %c0_60] : memref<1x10x16x128xbf16, #tpu.memory_space<vmem>>, vector<1x8x8x128xbf16>
    %c0_61 = arith.constant 0 : index
    %c0_62 = arith.constant 0 : index
    %c0_63 = arith.constant 0 : index
    %c640 = arith.constant 640 : index
    %19 = vector.load %arg6[%c0_61, %c0_62, %c0_63, %c640] : memref<1x8x8x1152xbf16, #tpu.memory_space<vmem>>, vector<1x8x8x128xbf16>
    tpu.vector_store %arg6[%c0_61, %c0_62, %c0_63, %c640], %18 {strides = array<i32>} : memref<1x8x8x1152xbf16, #tpu.memory_space<vmem>>, vector<1x8x8x128xbf16>,
    %c0_64 = arith.constant 0 : index
    %c2_65 = arith.constant 2 : index
    %c0_66 = arith.constant 0 : index
    %c0_67 = arith.constant 0 : index
    %20 = vector.load %arg5[%c0_64, %c2_65, %c0_66, %c0_67] : memref<1x10x16x128xbf16, #tpu.memory_space<vmem>>, vector<1x8x8x128xbf16>
    %c0_68 = arith.constant 0 : index
    %c0_69 = arith.constant 0 : index
    %c0_70 = arith.constant 0 : index
    %c768 = arith.constant 768 : index
    %21 = vector.load %arg6[%c0_68, %c0_69, %c0_70, %c768] : memref<1x8x8x1152xbf16, #tpu.memory_space<vmem>>, vector<1x8x8x128xbf16>
    tpu.vector_store %arg6[%c0_68, %c0_69, %c0_70, %c768], %20 {strides = array<i32>} : memref<1x8x8x1152xbf16, #tpu.memory_space<vmem>>, vector<1x8x8x128xbf16>,
    %c0_71 = arith.constant 0 : index
    %c2_72 = arith.constant 2 : index
    %c1_73 = arith.constant 1 : index
    %c0_74 = arith.constant 0 : index
    %22 = vector.load %arg5[%c0_71, %c2_72, %c1_73, %c0_74] : memref<1x10x16x128xbf16, #tpu.memory_space<vmem>>, vector<1x8x8x128xbf16>
    %c0_75 = arith.constant 0 : index
    %c0_76 = arith.constant 0 : index
    %c0_77 = arith.constant 0 : index
    %c896 = arith.constant 896 : index
    %23 = vector.load %arg6[%c0_75, %c0_76, %c0_77, %c896] : memref<1x8x8x1152xbf16, #tpu.memory_space<vmem>>, vector<1x8x8x128xbf16>
    tpu.vector_store %arg6[%c0_75, %c0_76, %c0_77, %c896], %22 {strides = array<i32>} : memref<1x8x8x1152xbf16, #tpu.memory_space<vmem>>, vector<1x8x8x128xbf16>,
    %c0_78 = arith.constant 0 : index
    %c2_79 = arith.constant 2 : index
    %c2_80 = arith.constant 2 : index
    %c0_81 = arith.constant 0 : index
    %24 = vector.load %arg5[%c0_78, %c2_79, %c2_80, %c0_81] : memref<1x10x16x128xbf16, #tpu.memory_space<vmem>>, vector<1x8x8x128xbf16>
    %c0_82 = arith.constant 0 : index
    %c0_83 = arith.constant 0 : index
    %c0_84 = arith.constant 0 : index
    %c1024 = arith.constant 1024 : index
    %25 = vector.load %arg6[%c0_82, %c0_83, %c0_84, %c1024] : memref<1x8x8x1152xbf16, #tpu.memory_space<vmem>>, vector<1x8x8x128xbf16>
    tpu.vector_store %arg6[%c0_82, %c0_83, %c0_84, %c1024], %24 {strides = array<i32>} : memref<1x8x8x1152xbf16, #tpu.memory_space<vmem>>, vector<1x8x8x128xbf16>,
    %c0_85 = arith.constant 0 : index
    %c0_86 = arith.constant 0 : index
    %c0_87 = arith.constant 0 : index
    %c0_88 = arith.constant 0 : index
    %26 = vector.load %arg6[%c0_85, %c0_86, %c0_87, %c0_88] : memref<1x8x8x1152xbf16, #tpu.memory_space<vmem>>, vector<1x8x8x1152xbf16>
    %27 = vector.shape_cast %26 : vector<1x8x8x1152xbf16> to vector<64x1152xbf16>
    %c0_89 = arith.constant 0 : index
    %c0_90 = arith.constant 0 : index
    %28 = vector.load %arg2[%c0_89, %c0_90] : memref<1152x128xbf16, #tpu.memory_space<vmem>>, vector<1152x128xbf16>
    %cst_91 = arith.constant dense<0.000000e+00> : vector<64x128xf32>
    %29 = tpu.matmul %27, %28, %cst_91 {dimension_numbers = #tpu.dot_dimension_numbers<[1], [0], [0], [1], [0, 0, 1, 1], [], []>} : vector<64x1152xbf16>, vector<1152x128xbf16>, vector<64x128xf32> -> vector<64x128xf32>
    %c0_92 = arith.constant 0 : index
    %c0_93 = arith.constant 0 : index
    %30 = vector.load %arg3[%c0_92, %c0_93] : memref<1x128xf32, #tpu.memory_space<vmem>>, vector<1x128xf32>
    %31 = vector.broadcast %30 : vector<1x128xf32> to vector<64x128xf32>
    %32 = arith.addf %29, %31 : vector<64x128xf32>
    %33 = vector.shape_cast %32 : vector<64x128xf32> to vector<1x64x128xf32>
    %c0_94 = arith.constant 0 : index
    %c0_95 = arith.constant 0 : index
    %c0_96 = arith.constant 0 : index
    %34 = vector.load %arg4[%c0_94, %c0_95, %c0_96] : memref<1x64x128xf32, #tpu.memory_space<vmem>>, vector<1x64x128xf32>
    tpu.vector_store %arg4[%c0_94, %c0_95, %c0_96], %33 {strides = array<i32>} : memref<1x64x128xf32, #tpu.memory_space<vmem>>, vector<1x64x128xf32>,
    return
  }
  func.func @transform_0(%arg0: i32) -> (i32, i32, i32, i32) {
    %c0_i32 = arith.constant 0 : i32
    %c0_i32_0 = arith.constant 0 : i32
    %c0_i32_1 = arith.constant 0 : i32
    %c0_i32_2 = arith.constant 0 : i32
    return %arg0, %c0_i32, %c0_i32_0, %c0_i32_1 : i32, i32, i32, i32
  }
  func.func @transform_1(%arg0: i32) -> (i32, i32) {
    %c0_i32 = arith.constant 0 : i32
    %c0_i32_0 = arith.constant 0 : i32
    %c0_i32_1 = arith.constant 0 : i32
    return %c0_i32, %c0_i32_0 : i32, i32
  }
  func.func @transform_2(%arg0: i32) -> (i32, i32) {
    %c0_i32 = arith.constant 0 : i32
    %c0_i32_0 = arith.constant 0 : i32
    %c0_i32_1 = arith.constant 0 : i32
    return %c0_i32, %c0_i32_0 : i32, i32
  }
  func.func @transform_3(%arg0: i32) -> (i32, i32, i32) {
    %c0_i32 = arith.constant 0 : i32
    %c0_i32_0 = arith.constant 0 : i32
    %c0_i32_1 = arith.constant 0 : i32
    return %arg0, %c0_i32, %c0_i32_0 : i32, i32, i32
  }
}

</mosaic_0001>

<bundles_post_ra>
// kernel: tpu_custom_call.1
= control target key start
LH: loop header
LB: loop body
LE: loop exit
PB: predicated region body
PF: predicated region fallthrough
CT: control target
= control target key end

     0   :  { %8 = vsyncpa [#allocation5], 0  ;;  %s3586_s0 = inlined_call_operand.hbm [shape: bf16[2,8,8,128], index: 0, kind: input, shape index: {}]   ;;  %s3587_s1 = inlined_call_operand.hbm [shape: bf16[1152,128], index: 1, kind: input, shape index: {}]   ;;  %s3588_s2 = inlined_call_operand.vmem [shape: f32[1,128], index: 2, kind: input, shape index: {}]   ;;  %s3589_s3 = inlined_call_operand.hbm [shape: f32[2,64,128], index: 3, kind: output, shape index: {}]  }
   0x1   :  { %10 = vsyncpa [#allocation5 + $0x1], 0 }
   0x2   :  { %11 = vsyncpa [#allocation8], 0 }
   0x3   :  { %12 = vsyncpa [#allocation6], 0 }
   0x4   :  { %14 = vsyncpa [#allocation6 + $0x1], 0  ;;  %s3079_s12 = smov 0   ;;  %s3081_s13 = smov 0  }
   0x5   :  { %s3083_s14 = smov 0   ;;  %s3085_s15 = smov 0  }
   0x6 LB: > { %s3100_s16 = sadd.s32 4294967295, %s3049_s15   ;;  %s2378_s17 = sadd.s32 4294967294, %s3049_s15   ;;  %s3049_s15 = sphi %s3085_s15, %s3633_s15   ;;  %s3045_s14 = sphi %s3083_s14, %s3632_s14   ;;  %s3041_s13 = sphi %s3081_s13, %s3631_s13   ;;  %s3037_s12 = sphi %s3079_s12, %s3630_s12  }
   0x7   : > { %p40_p0 = scmp.ne.s32.totalorder %s3041_s13, %s3037_s12  ;;  %p3590_p1 = scmp.eq.s32.totalorder %s3100_s16, 0 }
   0x8   : > { %p112_p3 = scmp.eq.s32.totalorder %s2378_s17, 1  ;;  %p2379_p5 = scmp.ge.s32.totalorder %s3049_s15, 1 }
   0x9   : > { %p3109_p4 = por %p3590_p1, %p40_p0  ;;  %p119_p7 = scmp.lt.s32.totalorder %s3049_s15, 3 }
   0xa   : > { %p3114_p6 = por %p112_p3, %p40_p0  ;;  %s3051_s21 = smov [#allocation7]  }
   0xb   : > { %s3594_s18 = scalar_select %p3109_p4, 1, 0 }
   0xc   : > { %s3595_s19 = scalar_select %p3114_p6, 1, 0 }
   0xd   : > { %p3119_p8 = pnand %p2379_p5, %p119_p7  ;;  %s131_s22 = sshll.u32 %s3051_s21, 4  ;;  %s132_s22 = int_to_ptr.vmem [resolvable:$true] %s131_s22 }
   0xe   : > { %s3133_s24 = sadd.s32 1, %s3049_s15   ;;  %s27_s25 = sadd.s32 1, %s3045_s14 }
   0xf   : > { %s3596_s20 = scalar_select %p3119_p8, 1, 0 }
  0x10   : > { %p2749_p9 = pneg %p3119_p8  ;;  %s24_s26 = ssub.s32 %s3049_s15, %s3133_s24 }
  0x11   : > { %s2938_s27 = scalar_lea.vmem %s132_s22, 9216  ;;  %p2946_p5 = scmp.lt.s32.totalorder %s132_s22, %s132_s22 }
  0x12   : > { %p3128_p11 = pnand %p2749_p9, %p3590_p1  ;;  %p2939_p13 = scmp.ne.s32.totalorder %s132_s22, %s2938_s27 }
  0x13   : > { %p2947_p7 = scmp.lt.s32.totalorder %s2938_s27, %s2938_s27 }
  0x14   : > { %p2929_p12 = pneg %p3128_p11 }
  0x15   : > { %p2948_p10 = por %p2947_p7, %p2946_p5 }
  0x16   : > { %p2941_p0 = pnand %p2939_p13, %p2929_p12 }
  0x18   : > { %p2942_p3 = pneg %p2941_p0 }
  0x1a   : > { %p2949_p2 = pnand %p2948_p10, %p2942_p3 }
  0x1c   : > { %2952 = shalt.err (!%p2949_p2)
}
  0x1d   : > { %s3052_s28 = smov 64   ;;  %s3053_s29 = smov 4  }
  0x1e   : > { %2752 = dma.hbm_to_vmem [thread:$0]  (!%p3128_p11), %s3587_s1, 9216, %s132_s22, [#allocation8], %s3052_s28, %s3052_s28, %s3053_s29  }
  0x1f   : > { %p25_p2 = scmp.eq.s32.totalorder %s24_s26, 0  ;;  %p34_p9 = scmp.ne.s32.totalorder %s3045_s14, %s3041_s13 }
  0x20   : > { %p35_p10 = scmp.eq.s32.totalorder %s3049_s15, 0  ;;  %p2762_p12 = scmp.lt.s32.totalorder %s3049_s15, 2 }
  0x21   : > { %s3153_s5 = scalar_select %p25_p2, %s3045_s14, %s27_s25  }
  0x22   : > { %p36_p13 = por %p35_p10, %p34_p9  ;;  %p3598_p0 = scmp.eq.s32.totalorder %s3100_s16, 1 }
  0x23   : > { %s148_s7 = sand.u32 1, %s3045_s14   ;;  %s2527_s8 = sshll.u32 %s3049_s15, 9 }
  0x24   : > { %p3157_p3 = por %p3598_p0, %p34_p9  ;;  %s2382_s9 = sshll.u32 %s148_s7, 5 }
  0x25   : > { %s3166_s17 = scalar_lea.hbm %s3586_s0, %s2527_s8  ;;  %s152_s21 = scalar_lea.vmem [#allocation4], %s2382_s9 }
  0x26   : > { %s3599_s6 = scalar_select %p3157_p3, 1, 0 }
  0x27   : > { %s159_s22 = sshll.u32 %s152_s21, 4  ;;  %p3168_p11 = pnand %p2762_p12, %p36_p13  ;;  %s3172_s22 = int_to_ptr.vmem [resolvable:$true] %s159_s22 }
  0x28   : > { %s3174_s25 = scalar_lea.sflag [#allocation5], %s148_s7  ;;  %s2953_s26 = scalar_lea.hbm %s3166_s17, 512 }
  0x29   : > { %p2954_p5 = scmp.ne.s32.totalorder %s3166_s17, %s2953_s26  ;;  %p2955_p7 = pneg %p3168_p11 }
  0x2a   : > { %s2958_s4 = scalar_lea.hbm %s3586_s0, 1024  ;;  %p2959_p10 = scmp.lt.s32.totalorder %s3166_s17, %s3586_s0 }
  0x2b   : > { %p2956_p2 = pnand %p2955_p7, %p2954_p5  ;;  %p2960_p12 = scmp.lt.s32.totalorder %s2958_s4, %s2953_s26 }
  0x2d   : > { %p2957_p9 = pneg %p2956_p2  ;;  %p2961_p13 = por %p2960_p12, %p2959_p10 }
  0x2f   : > { %p2962_p0 = pnand %p2961_p13, %p2957_p9 }
  0x31   : > { %2965 = shalt.err (!%p2962_p0)
}
  0x32   : > { %s2966_s7 = scalar_lea.vmem %s3172_s22, 512  ;;  %s3054_s10 = smov [#allocation4]  }
  0x33   : > { %p2967_p1 = scmp.ne.s32.totalorder %s3172_s22, %s2966_s7  ;;  %s2971_s11 = sshll.u32 %s3054_s10, 4  ;;  %s2972_s11 = int_to_ptr.vmem [resolvable:$false] %s2971_s11 }
  0x34   : > { %s2973_s21 = scalar_lea.vmem %s2972_s11, 1024  ;;  %p2974_p2 = scmp.lt.s32.totalorder %s3172_s22, %s2972_s11 }
  0x35   : > { %p2969_p6 = pnand %p2967_p1, %p2955_p7  ;;  %p2975_p3 = scmp.lt.s32.totalorder %s2973_s21, %s2966_s7 }
  0x37   : > { %p2970_p5 = pneg %p2969_p6  ;;  %p2976_p4 = por %p2975_p3, %p2974_p2 }
  0x39   : > { %p2977_p8 = pnand %p2976_p4, %p2970_p5 }
  0x3b   : > { %2980 = shalt.err (!%p2977_p8)
}
  0x3c   : > { %2756 = dma.hbm_to_vmem [thread:$0]  (!%p3168_p11), %s3166_s17, 512, %s3172_s22, %s3174_s25, %s3052_s28, %s3052_s28, %s3053_s29  }
  0x3d   : > { %p3601_p1 = scmp.ne.s32.totalorder %s3596_s20, 0 }
  0x3f   : > { %171 = sbr.rel (%p3601_p1) target bundleno = 471 (0x1d7), region = 32 }
  0x44   : > { %s3201_s26 = sand.u32 1, %s3041_s13   ;;  %p3602_p4 = scmp.ne.s32.totalorder %s3594_s18, 0 }
  0x45   : > { %s2386_s27 = sshll.u32 %s3201_s26, 5  ;;  %s174_s30 = scalar_lea.sflag [#allocation5], %s3201_s26 }
  0x46   : > { %s3205_s4 = scalar_lea.vmem [#allocation4], %s2386_s27 }
  0x47   : > { %3024 = dma.done.wait (%p3602_p4), %s174_s30, 512  }
  0x48   : > { %3026 = vsyncadd (%p3602_p4), %s174_s30, 4294966784  ;;  %p3603_p6 = scmp.eq.s32.totalorder %s3100_s16, 0 }
  0x4a   : > { %3028 = dma.done.wait (%p3603_p6), [#allocation8], 9216   ;;  %p3604_p8 = pmov %p3603_p6 }
  0x4b   : > { %v3055_v0 = vmov 0   ;;  %v2803_v1 = vld [vmem:[#allocation7 + $0xf8] sm:$0xff]   ;;  %v2807_v5 = vld [vmem:[#allocation7 + $0xf0] sm:$0xff]   ;;  %v2811_v9 = vld [vmem:[#allocation7 + $0xe8] sm:$0xff]   ;;  %vm211_vm0 = vsmask.f32 256 }
  0x4c   : > { %3030 = vsyncadd (%p3604_p8), [#allocation8], 4294958080  ;;  %205 = vst [vmem:[#allocation2] sm:$0xf] %v3055_v0  ;;  %v2804_v2 = vld [vmem:[#allocation7 + $0xb8] sm:$0xff]   ;;  %2569 = vmatprep.subr.bf16.mxu1 %v2803_v1  ;;  %v2808_v6 = vld [vmem:[#allocation7 + $0xb0] sm:$0xff]  }
  0x4d   : > { %206 = vst [vmem:[#allocation2 + $0x4] sm:$0xf] %v3055_v0  ;;  %209 = vst [vmem:[#allocation2 + $0x4c] sm:$0xf] %v3055_v0  ;;  %v2805_v3 = vld [vmem:[#allocation7 + $0x78] sm:$0xff]   ;;  %2570 = vmatpush3.bf16.msra.mxu1 %v2804_v2  ;;  %v2809_v7 = vld [vmem:[#allocation7 + $0x70] sm:$0xff]  }
  0x4e   : > { %208 = vst [vmem:[#allocation2 + $0x48] sm:$0xf] %v3055_v0  ;;  %v2806_v4 = vld [vmem:[#allocation7 + $0x38] sm:$0xff]   ;;  %2529 = vmatprep.subr.bf16.mxu0 %v2805_v3  ;;  %2571 = vmatprep.subr.bf16.mxu1 %v2807_v5  ;;  %v2810_v8 = vld [vmem:[#allocation7 + $0x30] sm:$0xff]   ;;  %v2812_v10 = vld [vmem:[#allocation7 + $0xa8] sm:$0xff]   ;;  %vm210_vm2 = vcmask 1040384  }
  0x4f   : > { %2530 = vmatpush3.bf16.msra.mxu0 %v2806_v4  ;;  %v2813_v11 = vld [vmem:[#allocation7 + $0x68] sm:$0xff]   ;;  %vm243_vm1 = vsmask.f32 7938  ;;  %v2815_v13 = vld [vmem:[#allocation7 + $0xe0] sm:$0xff]   ;;  %v2819_v17 = vld [vmem:[#allocation7 + $0xd8] sm:$0xff]   ;;  %vm364_vm5 = vcmask 1043456  }
  0x50   : > { %2531 = vmatprep.subr.bf16.mxu0 %v2809_v7  ;;  %v2814_v12 = vld [vmem:[#allocation7 + $0x28] sm:$0xff]   ;;  %v2816_v14 = vld [vmem:[#allocation7 + $0xa0] sm:$0xff]   ;;  %v2820_v18 = vld [vmem:[#allocation7 + $0x98] sm:$0xff]   ;;  %vm609_vm6 = vcmask 1042432   ;;  %vm610_vm7 = vcmask 1046532   ;;  %s2388_s28 = sshll.u32 %s3201_s26, 6 }
  0x51   : > { %2572 = vmatpush3.bf16.msra.mxu1 %v2808_v6  ;;  %v2817_v15 = vld [vmem:[#allocation7 + $0x60] sm:$0xff]   ;;  %v2821_v19 = vld [vmem:[#allocation7 + $0x58] sm:$0xff]   ;;  %v2823_v21 = vld [vmem:[#allocation7 + $0xd0] sm:$0xff]   ;;  %vm446_vm10 = vsmask.f32 3328  ;;  %s203_s29 = scalar_lea.vmem [#allocation9], %s2388_s28 }
  0x52   : > { %2573 = vmatprep.subr.bf16.mxu1 %v2811_v9  ;;  %v2818_v16 = vld [vmem:[#allocation7 + $0x20] sm:$0xff]   ;;  %v2822_v20 = vld [vmem:[#allocation7 + $0x18] sm:$0xff]   ;;  %v2824_v22 = vld [vmem:[#allocation7 + $0x90] sm:$0xff]   ;;  %vm447_vm11 = vsmask.f32 7440  ;;  %s2295_s17 = sshll.u32 %s203_s29, 4  ;;  %s3538_s17 = int_to_ptr.vmem [resolvable:$true] %s2295_s17 }
  0x53   : > { %2532 = vmatpush3.bf16.msra.mxu0 %v2810_v8  ;;  %vm3216_vm3 = vmand %vm210_vm2, %vm211_vm0  ;;  %v2825_v24 = vld [vmem:[#allocation7 + $0x50] sm:$0xff]   ;;  %v2827_v27 = vld [vmem:[#allocation7 + $0xc8] sm:$0xff]   ;;  %s2528_s22 = sshll.u32 %s3100_s16, 10  ;;  %s2282_s8 = scalar_lea.sflag [#allocation6], %s3201_s26 }
  0x54   : > { %2533 = vmatprep.subr.bf16.mxu0 %v2813_v11  ;;  %vm3221_vm4 = vmand %vm210_vm2, %vm243_vm1  ;;  %v2826_v26 = vld [vmem:[#allocation7 + $0x10] sm:$0xff]   ;;  %v2828_v28 = vld [vmem:[#allocation7 + $0x88] sm:$0xff]   ;;  %s3543_s16 = scalar_lea.hbm %s3589_s3, %s2528_s22  ;;  %s2981_s9 = scalar_lea.vmem %s3538_s17, 1024 }
  0x55   : > { %2574 = vmatpush3.bf16.msra.mxu1 %v2812_v10  ;;  %v2829_v29 = vld [vmem:[#allocation7 + $0x48] sm:$0xff]   ;;  %v2831_v31 = vld [vmem:[#allocation7 + $0xc0] sm:$0xff]   ;;  %v216_v34 = vld [vmem:[#allocation2 + $0x8] sm:$0x1]  ;;  %p2982_p3 = scmp.ne.s32.totalorder %s3538_s17, %s2981_s9  ;;  %p3627_p11 = scmp.ne.s32.totalorder %s3599_s6, 0 }
  0x56   : > { %2575 = vmatprep.subr.bf16.mxu1 %v2815_v13  ;;  %v2830_v30 = vld [vmem:[#allocation7 + $0x8] sm:$0xff]   ;;  %v2832_v32 = vld [vmem:[#allocation7 + $0x80] sm:$0xff]   ;;  %v245_v36 = vld [vmem:[#allocation2 + $0x4] sm:$0x1]  ;;  %v217_v37 = vsel %vm3216_vm3, 0, %v216_v34  ;;  %s3056_s7 = smov [#allocation9]  }
  0x57   : > { %2534 = vmatpush3.bf16.msra.mxu0 %v2814_v12  ;;  %v2833_v33 = vld [vmem:[#allocation7 + $0x40] sm:$0xff]   ;;  %v246_v39 = vsel %vm3221_vm4, 0, %v245_v36  ;;  %v248_v40 = vld [vmem:[#allocation2 + $0xc] sm:$0x1]  ;;  %218 = vst [vmem:[#allocation2 + $0x8] sm:$0x1] %v217_v37  ;;  %vm3239_vm8 = vmand %vm364_vm5, %vm243_vm1  ;;  %p2983_p7 = pnand %p2982_p3, %p3627_p11 }
  0x58   : > { %2535 = vmatprep.subr.bf16.mxu0 %v2817_v15  ;;  %v219_v35 = vld [vmem:[#allocation2 + $0x10] sm:$0x1]  ;;  %247 = vst [vmem:[#allocation2 + $0x4] sm:$0x1] %v246_v39  ;;  %v249_v42 = vsel %vm3221_vm4, 0, %v248_v40  ;;  %v2838_v45 = vld [vmem:[#allocation7 + $0x1f8] sm:$0xff]   ;;  %vm3246_vm9 = vmor %vm609_vm6, %vm610_vm7 }
  0x59   : > { %2576 = vmatpush3.bf16.msra.mxu1 %v2816_v14  ;;  %v220_v38 = vsel %vm3216_vm3, 0, %v219_v35  ;;  %v2837_v41 = vld [vmem:[#allocation7] sm:$0xff]   ;;  %250 = vst [vmem:[#allocation2 + $0xc] sm:$0x1] %v249_v42  ;;  %v577_v50 = vld [vmem:[#allocation2] sm:$0xe]  ;;  %vm3277_vm12 = vmor %vm446_vm10, %vm447_vm11  ;;  %p2984_p9 = pneg %p2983_p7 }
  0x5a   : > { %2577 = vmatprep.subr.bf16.mxu1 %v2819_v17  ;;  %221 = vst [vmem:[#allocation2 + $0x10] sm:$0x1] %v220_v38  ;;  %v275_v43 = vld [vmem:[%s3205_s4] sm:$0xf]  ;;  %v276_v44 = vld [vmem:[%s3205_s4 + $0x4] sm:$0xf] }
  0x5b   : > { %2536 = vmatpush3.bf16.msra.mxu0 %v2818_v16  ;;  %v284_v46 = vshrl.u32 %v275_v43, 16  ;;  %v287_v47 = vshll.u32 %v275_v43, 16  ;;  %v292_v48 = vshrl.u32 %v276_v44, 16  ;;  %v295_v49 = vshll.u32 %v276_v44, 16  ;;  %v213_v54 = vld [vmem:[#allocation2] sm:$0x1] }
  0x5c   : > { %2537 = vmatprep.subr.bf16.mxu0 %v2821_v19  ;;  %v2389_v59 = vrot.slane %v577_v50, 9  ;;  %v214_v60 = vsel %vm3216_vm3, 0, %v213_v54  ;;  %v2843_v61 = vld [vmem:[#allocation7 + $0x178] sm:$0xff]   ;;  %v222_v10 = vld [vmem:[#allocation2 + $0x18] sm:$0x1]  ;;  %s2985_s10 = sshll.u32 %s3056_s7, 4  ;;  %s2986_s10 = int_to_ptr.vmem [resolvable:$false] %s2985_s10 }
  0x5d   : > { %2578 = vmatpush3.bf16.msra.mxu1 %v2820_v18  ;;  %v286_v51 = vrot.slane %v284_v46, 7  ;;  %v3235_v52 = vrot.slane %v292_v48, 7  ;;  %215 = vst [vmem:[#allocation2] sm:$0x1] %v214_v60  ;;  %v225_v11 = vld [vmem:[#allocation2 + $0x20] sm:$0x1]  ;;  %p2988_p10 = scmp.lt.s32.totalorder %s3538_s17, %s2986_s10 }
  0x5e   : > { %2579 = vmatprep.subr.bf16.mxu1 %v2823_v21  ;;  %v366_v62 = vld [vmem:[#allocation2 + $0x8] sm:$0xf]  ;;  %v223_v12 = vsel %vm3216_vm3, 0, %v222_v10  ;;  %v226_v13 = vsel %vm3216_vm3, 0, %v225_v11  ;;  %v251_v14 = vld [vmem:[#allocation2 + $0x14] sm:$0x1] }
  0x5f   : > { %2538 = vmatpush3.bf16.msra.mxu0 %v2822_v20  ;;  %v289_v55 = vor.u32 %v287_v47, %v286_v51  ;;  %v290_v56 = vrot.slane %v286_v51, 4  ;;  %v297_v57 = vor.u32 %v295_v49, %v3235_v52  ;;  %v578_v0 = vld [vmem:[#allocation2 + $0x4] sm:$0x1]  ;;  %v298_v8 = vrot.slane %v3235_v52, 4  ;;  %v254_v15 = vld [vmem:[#allocation2 + $0x1c] sm:$0x1] }
  0x60   : > { %2539 = vmatprep.subr.bf16.mxu0 %v2825_v24  ;;  %v369_v2 = vld [vmem:[#allocation2 + $0xc] sm:$0x1]  ;;  %v614_v4 = vrot.slane %v578_v0, 5  ;;  %v431_v5 = vld [vmem:[#allocation2 + $0x4] sm:$0x1]  ;;  %v252_v16 = vsel %vm3221_vm4, 0, %v251_v14 }
  0x61   : > { %2580 = vmatpush3.bf16.msra.mxu1 %v2824_v22  ;;  %v372_v63 = vld [vmem:[#allocation2 + $0x10] sm:$0xf]  ;;  %v367_v1 = vsel %vm3239_vm8, %v289_v55, %v366_v62  ;;  %v370_v6 = vsel %vm3216_vm3, %v290_v56, %v369_v2  ;;  %v459_v9 = vshll.u32 %v431_v5, 16  ;;  %224 = vst [vmem:[#allocation2 + $0x18] sm:$0x1] %v223_v12  ;;  %v255_v17 = vsel %vm3221_vm4, 0, %v254_v15 }
  0x62   : > { %2581 = vmatprep.subr.bf16.mxu1 %v2827_v27  ;;  %v373_v3 = vsel %vm3239_vm8, %v297_v57, %v372_v63  ;;  %368 = vst [vmem:[#allocation2 + $0x8] sm:$0xf] %v367_v1  ;;  %371 = vst [vmem:[#allocation2 + $0xc] sm:$0x1] %v370_v6  ;;  %v615_v7 = vsel %vm3246_vm9, %v2389_v59, %v614_v4  ;;  %v277_v18 = vld [vmem:[%s3205_s4 + $0x8] sm:$0xf] }
  0x63   : > { %2540 = vmatpush3.bf16.msra.mxu0 %v2826_v26  ;;  %374 = vst [vmem:[#allocation2 + $0x10] sm:$0xf] %v373_v3  ;;  %652 = vst [vmem:[#allocation3 + $0x8] sm:$0xf] %v615_v7  ;;  %v278_v19 = vld [vmem:[%s3205_s4 + $0xc] sm:$0xf] }
  0x64   : > { %2541 = vmatprep.subr.bf16.mxu0 %v2829_v29  ;;  %227 = vst [vmem:[#allocation2 + $0x20] sm:$0x1] %v226_v13  ;;  %v414_v20 = vld [vmem:[#allocation2] sm:$0xf]  ;;  %253 = vst [vmem:[#allocation2 + $0x14] sm:$0x1] %v252_v16 }
  0x65   : > { %2582 = vmatpush3.bf16.msra.mxu1 %v2828_v28  ;;  %v430_v21 = vld [vmem:[#allocation2] sm:$0xf]  ;;  %256 = vst [vmem:[#allocation2 + $0x1c] sm:$0x1] %v255_v17  ;;  %v300_v22 = vshrl.u32 %v277_v18, 16  ;;  %v303_v24 = vshll.u32 %v277_v18, 16 }
  0x66   : > { %2583 = vmatprep.subr.bf16.mxu1 %v2831_v31  ;;  %422 = vst [vmem:[#allocation3] sm:$0xf] %v414_v20  ;;  %v450_v26 = vshrl.u32 %v430_v21, 16  ;;  %v453_v27 = vshll.u32 %v430_v21, 16  ;;  %v308_v28 = vshrl.u32 %v278_v19, 16  ;;  %v311_v29 = vshll.u32 %v278_v19, 16 }
  0x67   : > { %2542 = vmatpush3.bf16.msra.mxu0 %v2830_v30  ;;  %v302_v44 = vrot.slane %v300_v22, 7  ;;  %v461_v47 = vrot.slane %v459_v9, 5  ;;  %v2839_v52 = vld [vmem:[#allocation7 + $0x1b8] sm:$0xff]   ;;  %v2845_v10 = vld [vmem:[#allocation7 + $0x1f0] sm:$0xff]   ;;  %s2987_s11 = scalar_lea.vmem %s2986_s10, 2048 }
  0x68   : > { %2543 = vmatprep.subr.bf16.mxu0 %v2833_v33  ;;  %v452_v36 = vrot.slane %v450_v26, 4  ;;  %v455_v40 = vrot.slane %v453_v27, 5  ;;  %v3273_v48 = vrot.slane %v308_v28, 7  ;;  %v378_v49 = vld [vmem:[#allocation2 + $0x18] sm:$0xf]  ;;  %v2846_v18 = vld [vmem:[#allocation7 + $0x1b0] sm:$0xff]   ;;  %p2989_p12 = scmp.lt.s32.totalorder %s2987_s11, %s2981_s9 }
  0x69   : > { %2584 = vmatpush3.bf16.msra.mxu1 %v2832_v32  ;;  %v579_v30 = vld [vmem:[#allocation2 + $0x8] sm:$0xe]  ;;  %v580_v33 = vld [vmem:[#allocation2 + $0xc] sm:$0x1]  ;;  %v305_v55 = vor.u32 %v303_v24, %v302_v44 }
  0x6a   : > { %2649 = vmatprep.subr.bf16.mxu1 %v2838_v45  ;;  %v660_v31 = vld [vmem:[#allocation2 + $0x8] sm:$0xf]  ;;  %v661_v32 = vld [vmem:[#allocation2 + $0x10] sm:$0xf]  ;;  %v2390_v34 = vrot.slane %v579_v30, 9  ;;  %v618_v37 = vrot.slane %v580_v33, 5  ;;  %v456_v46 = vor.u32 %v455_v40, %v452_v36  ;;  %v313_v62 = vor.u32 %v311_v29, %v3273_v48  ;;  %p2990_p13 = por %p2989_p12, %p2988_p10 }
  0x6b   : > { %2544 = vmatpush3.bf16.msra.mxu0 %v2837_v41  ;;  %668 = vst [vmem:[#allocation3 + $0xc] sm:$0xf] %v660_v31  ;;  %669 = vst [vmem:[#allocation3 + $0x30] sm:$0xf] %v661_v32  ;;  %v415_v35 = vld [vmem:[#allocation2 + $0x8] sm:$0xf]  ;;  %v379_v2 = vsel %vm3239_vm8, %v305_v55, %v378_v49 }
  0x6c   : > { %2609 = vmatprep.subr.bf16.mxu0 %v2843_v61  ;;  %423 = vst [vmem:[#allocation3 + $0x24] sm:$0xf] %v415_v35  ;;  %v432_v38 = vld [vmem:[#allocation2 + $0x8] sm:$0xf]  ;;  %v433_v39 = vld [vmem:[#allocation2 + $0xc] sm:$0x1]  ;;  %v619_v45 = vsel %vm3246_vm9, %v2390_v34, %v618_v37  ;;  %p2991_p0 = pnand %p2990_p13, %p2984_p9 }
  0x6d   : > { %v464_v41 = vshrl.u32 %v432_v38, 16  ;;  %v467_v42 = vshll.u32 %v432_v38, 16  ;;  %v473_v43 = vshll.u32 %v433_v39, 16  ;;  %653 = vst [vmem:[#allocation3 + $0x2c] sm:$0xf] %v619_v45  ;;  %v457_v59 = vrot.slane %v456_v46, 4 }
  0x6e   : > { %v375_v56 = vld [vmem:[#allocation2 + $0x14] sm:$0x1]  ;;  %v384_v57 = vld [vmem:[#allocation2 + $0x20] sm:$0xf]  ;;  %v306_v61 = vrot.slane %v302_v44, 4  ;;  %v2852_v29 = vld [vmem:[#allocation7 + $0x1e8] sm:$0xff]  }
  0x6f   : > { %v466_v51 = vrot.slane %v464_v41, 4  ;;  %v469_v54 = vrot.slane %v467_v42, 5  ;;  %v475_v60 = vrot.slane %v473_v43, 5  ;;  %v381_v63 = vld [vmem:[#allocation2 + $0x1c] sm:$0x1]  ;;  %v376_v1 = vsel %vm3216_vm3, %v298_v8, %v375_v56  ;;  %v2844_v30 = vld [vmem:[#allocation7 + $0x138] sm:$0xff]  }
  0x70   : > { %v462_v3 = vsel %vm3277_vm12, %v457_v59, %v461_v47  ;;  %377 = vst [vmem:[#allocation2 + $0x14] sm:$0x1] %v376_v1  ;;  %380 = vst [vmem:[#allocation2 + $0x18] sm:$0xf] %v379_v2  ;;  %v382_v4 = vsel %vm3216_vm3, %v306_v61, %v381_v63  ;;  %v385_v5 = vsel %vm3239_vm8, %v313_v62, %v384_v57  ;;  %v416_v7 = vld [vmem:[#allocation2 + $0x10] sm:$0xf] }
  0x71   : > { %v470_v0 = vor.u32 %v469_v54, %v466_v51  ;;  %569 = vst [vmem:[#allocation3 + $0x4] sm:$0xf] %v462_v3  ;;  %383 = vst [vmem:[#allocation2 + $0x1c] sm:$0x1] %v382_v4  ;;  %v434_v8 = vld [vmem:[#allocation2 + $0x10] sm:$0xf] }
  0x72   : > { %386 = vst [vmem:[#allocation2 + $0x20] sm:$0xf] %v385_v5  ;;  %v581_v11 = vld [vmem:[#allocation2 + $0x10] sm:$0xe]  ;;  %424 = vst [vmem:[#allocation3 + $0x48] sm:$0xf] %v416_v7 }
  0x73   : > { %v471_v6 = vrot.slane %v470_v0, 4  ;;  %v478_v12 = vshrl.u32 %v434_v8, 16  ;;  %v481_v13 = vshll.u32 %v434_v8, 16  ;;  %v2836_v15 = vld [vmem:[#allocation3 + $0xc] ss:$36 sps:$4 sm:$0xff]   ;;  %v2391_v19 = vrot.slane %v581_v11, 9 }
  0x74   : > { %v2834_v14 = vld [vmem:[#allocation3 + $0x8] ss:$36 sps:$4 sm:$0xff]   ;;  %2045 = vmatprep.mubr.bf16.mxu1 %v2836_v15  ;;  %v2849_v36 = vld [vmem:[#allocation7 + $0x170] sm:$0xff]   ;;  %v2840_v40 = vld [vmem:[#allocation3] ss:$36 sps:$4 sm:$0xff]   ;;  %v314_v8 = vrot.slane %v3273_v48, 4 }
  0x75   : > { %v476_v9 = vsel %vm3277_vm12, %v471_v6, %v475_v60  ;;  %v480_v16 = vrot.slane %v478_v12, 4  ;;  %v483_v17 = vrot.slane %v481_v13, 5  ;;  %2046 = vmatmul.mubr.bf16.vlgmr.msra.gmra.mxu1 %v2834_v14  ;;  %v2853_v44 = vld [vmem:[#allocation7 + $0x1a8] sm:$0xff]   ;;  %v2851_v49 = vld [vmem:[#allocation7 + $0x130] sm:$0xff]   ;;  %v2859_v54 = vld [vmem:[#allocation7 + $0x1e0] sm:$0xff]  }
  0x76   : > { %570 = vst [vmem:[#allocation3 + $0x28] sm:$0xf] %v476_v9  ;;  %2650 = vmatpush3.bf16.msra.mxu1 %v2839_v52  ;;  %v228_v55 = vld [vmem:[#allocation2 + $0x28] sm:$0x1]  ;;  %v2856_v59 = vld [vmem:[#allocation7 + $0x168] sm:$0xff]   ;;  %v2860_v60 = vld [vmem:[#allocation7 + $0x1a0] sm:$0xff]  }
  0x77   : > { %v582_v20 = vld [vmem:[#allocation2 + $0x14] sm:$0x1]  ;;  %v583_v21 = vld [vmem:[#allocation2 + $0x18] sm:$0xe]  ;;  %v484_v24 = vor.u32 %v483_v17, %v480_v16  ;;  %2651 = vmatprep.subr.bf16.mxu1 %v2845_v10  ;;  %v229_v61 = vsel %vm3216_vm3, 0, %v228_v55  ;;  %v2866_v13 = vld [vmem:[#allocation7 + $0x1d8] sm:$0xff]  }
  0x78   : > { %v662_v22 = vld [vmem:[#allocation2 + $0x18] sm:$0xf]  ;;  %v584_v26 = vld [vmem:[#allocation2 + $0x1c] sm:$0x1]  ;;  %v622_v27 = vrot.slane %v582_v20, 5  ;;  %v2392_v28 = vrot.slane %v583_v21, 9 }
  0x79   : > { %670 = vst [vmem:[#allocation3 + $0x54] sm:$0xf] %v662_v22  ;;  %v626_v31 = vrot.slane %v584_v26, 5  ;;  %v663_v32 = vld [vmem:[#allocation2 + $0x20] sm:$0xf]  ;;  %v485_v34 = vrot.slane %v484_v24, 4 }
  0x7a   : > { %v417_v33 = vld [vmem:[#allocation2 + $0x18] sm:$0xf]  ;;  %v623_v35 = vsel %vm3246_vm9, %v2391_v19, %v622_v27  ;;  %671 = vst [vmem:[#allocation3 + $0x78] sm:$0xf] %v663_v32  ;;  %v435_v37 = vld [vmem:[#allocation2 + $0x14] sm:$0x1]  ;;  %2652 = vmatpush3.bf16.msra.mxu1 %v2846_v18 }
  0x7b   : > { %425 = vst [vmem:[#allocation3 + $0x6c] sm:$0xf] %v417_v33  ;;  %v436_v38 = vld [vmem:[#allocation2 + $0x18] sm:$0xf]  ;;  %v437_v39 = vld [vmem:[#allocation2 + $0x1c] sm:$0x1]  ;;  %v627_v42 = vsel %vm3246_vm9, %v2392_v28, %v626_v31  ;;  %2653 = vmatprep.subr.bf16.mxu1 %v2852_v29 }
  0x7c   : > { %654 = vst [vmem:[#allocation3 + $0x50] sm:$0xf] %v623_v35  ;;  %v487_v43 = vshll.u32 %v435_v37, 16  ;;  %655 = vst [vmem:[#allocation3 + $0x74] sm:$0xf] %v627_v42  ;;  %v492_v45 = vshrl.u32 %v436_v38, 16 }
  0x7d   : > { %v2842_v41 = vld [vmem:[#allocation3 + $0x4] ss:$36 sps:$4 sm:$0xff]   ;;  %v495_v46 = vshll.u32 %v436_v38, 16  ;;  %v501_v47 = vshll.u32 %v437_v39, 16  ;;  %v231_v62 = vld [vmem:[#allocation2 + $0x30] sm:$0x1] }
  0x7e   : > { %1980 = vmatprep.mubr.bf16.mxu0 %v2842_v41  ;;  %v489_v51 = vrot.slane %v487_v43, 5  ;;  %v494_v56 = vrot.slane %v492_v45, 4  ;;  %230 = vst [vmem:[#allocation2 + $0x28] sm:$0x1] %v229_v61  ;;  %v232_v1 = vsel %vm3216_vm3, 0, %v231_v62  ;;  %2654 = vmatpush3.bf16.msra.mxu1 %v2853_v44  ;;  %v2858_v9 = vld [vmem:[#allocation7 + $0x128] sm:$0xff]  }
  0x7f   : > { %1981 = vmatmul.mubr.bf16.vlgmr.msra.gmra.mxu0 %v2840_v40  ;;  %v497_v57 = vrot.slane %v495_v46, 5  ;;  %v503_v0 = vrot.slane %v501_v47, 5  ;;  %v257_v2 = vld [vmem:[#allocation2 + $0x24] sm:$0x1]  ;;  %v260_v3 = vld [vmem:[#allocation2 + $0x2c] sm:$0x1]  ;;  %2655 = vmatprep.subr.bf16.mxu1 %v2859_v54 }
  0x80   : > { %2610 = vmatpush3.bf16.msra.mxu0 %v2844_v30  ;;  %v490_v63 = vsel %vm3277_vm12, %v485_v34, %v489_v51  ;;  %233 = vst [vmem:[#allocation2 + $0x30] sm:$0x1] %v232_v1  ;;  %v258_v5 = vsel %vm3221_vm4, 0, %v257_v2  ;;  %v261_v6 = vsel %vm3221_vm4, 0, %v260_v3  ;;  %v279_v52 = vld [vmem:[%s3205_s4 + $0x10] sm:$0xf] }
  0x81   : > { %2611 = vmatprep.subr.bf16.mxu0 %v2849_v36  ;;  %v498_v4 = vor.u32 %v497_v57, %v494_v56  ;;  %571 = vst [vmem:[#allocation3 + $0x4c] sm:$0xf] %v490_v63  ;;  %v280_v7 = vld [vmem:[%s3205_s4 + $0x14] sm:$0xf]  ;;  %259 = vst [vmem:[#allocation2 + $0x24] sm:$0x1] %v258_v5 }
  0x82   : > { %262 = vst [vmem:[#allocation2 + $0x2c] sm:$0x1] %v261_v6  ;;  %v316_v10 = vshrl.u32 %v279_v52, 16  ;;  %v319_v11 = vshll.u32 %v279_v52, 16  ;;  %v324_v12 = vshrl.u32 %v280_v7, 16  ;;  %v327_v15 = vshll.u32 %v280_v7, 16  ;;  %2656 = vmatpush3.bf16.msra.mxu1 %v2860_v60 }
  0x83   : > { %v499_v14 = vrot.slane %v498_v4, 4  ;;  %v2863_v16 = vld [vmem:[#allocation7 + $0x160] sm:$0xff]   ;;  %v2847_v17 = vld [vmem:[#allocation3 + $0x54] ss:$36 sps:$4 sm:$0xff]   ;;  %2657 = vmatprep.subr.bf16.mxu1 %v2866_v13  ;;  %v585_v38 = vld [vmem:[#allocation2 + $0x20] sm:$0xe] }
  0x84   : > { %v2850_v18 = vld [vmem:[#allocation3 + $0x50] ss:$36 sps:$4 sm:$0xff]   ;;  %2612 = vmatpush3.bf16.msra.mxu0 %v2851_v49  ;;  %v318_v19 = vrot.slane %v316_v10, 7  ;;  %v3315_v48 = vrot.slane %v324_v12, 7  ;;  %v2867_v21 = vld [vmem:[#allocation7 + $0x198] sm:$0xff]   ;;  %2053 = vmatprep.mubr.bf16.mxu1 %v2847_v17  ;;  %v2865_v26 = vld [vmem:[#allocation7 + $0x120] sm:$0xff]  }
  0x85   : > { %v504_v20 = vsel %vm3277_vm12, %v499_v14, %v503_v0  ;;  %2613 = vmatprep.subr.bf16.mxu0 %v2856_v59  ;;  %2054 = vmatmul.mubr.bf16.gmra.mxu1 %v2850_v18  ;;  %v390_v28 = vld [vmem:[#allocation2 + $0x28] sm:$0xf]  ;;  %v2873_v30 = vld [vmem:[#allocation7 + $0x1d0] sm:$0xff]   ;;  %v2857_v45 = vld [vmem:[#allocation3 + $0x48] ss:$36 sps:$4 sm:$0xff]   ;;  %v2393_v51 = vrot.slane %v585_v38, 9 }
  0x86   : > { %572 = vst [vmem:[#allocation3 + $0x70] sm:$0xf] %v504_v20  ;;  %v321_v22 = vor.u32 %v319_v11, %v318_v19  ;;  %v322_v24 = vrot.slane %v318_v19, 4  ;;  %v329_v27 = vor.u32 %v327_v15, %v3315_v48  ;;  %v2870_v29 = vld [vmem:[#allocation7 + $0x158] sm:$0xff]   ;;  %2658 = vmatpush3.bf16.msra.mxu1 %v2867_v21  ;;  %v418_v39 = vld [vmem:[#allocation2 + $0x20] sm:$0xf] }
  0x87   : > { %v396_v32 = vld [vmem:[#allocation2 + $0x30] sm:$0xf]  ;;  %v438_v40 = vld [vmem:[#allocation2 + $0x20] sm:$0xf]  ;;  %2659 = vmatprep.subr.bf16.mxu1 %v2873_v30  ;;  %426 = vst [vmem:[#allocation3 + $0x90] sm:$0xf] %v418_v39 }
  0x88   : > { %2614 = vmatpush3.bf16.msra.mxu0 %v2858_v9  ;;  %v391_v31 = vsel %vm3239_vm8, %v321_v22, %v390_v28  ;;  %v387_v33 = vld [vmem:[#allocation2 + $0x24] sm:$0x1]  ;;  %v397_v35 = vsel %vm3239_vm8, %v329_v27, %v396_v32  ;;  %v506_v41 = vshrl.u32 %v438_v40, 16  ;;  %v509_v42 = vshll.u32 %v438_v40, 16  ;;  %v2872_v43 = vld [vmem:[#allocation7 + $0x118] sm:$0xff]  }
  0x89   : > { %392 = vst [vmem:[#allocation2 + $0x28] sm:$0xf] %v391_v31  ;;  %v393_v34 = vld [vmem:[#allocation2 + $0x2c] sm:$0x1]  ;;  %2615 = vmatprep.subr.bf16.mxu0 %v2863_v16  ;;  %v388_v36 = vsel %vm3216_vm3, %v314_v8, %v387_v33  ;;  %398 = vst [vmem:[#allocation2 + $0x30] sm:$0xf] %v397_v35 }
  0x8a   : > { %v394_v37 = vsel %vm3216_vm3, %v322_v24, %v393_v34  ;;  %389 = vst [vmem:[#allocation2 + $0x24] sm:$0x1] %v388_v36  ;;  %v508_v46 = vrot.slane %v506_v41, 4  ;;  %v511_v47 = vrot.slane %v509_v42, 5  ;;  %v2874_v49 = vld [vmem:[#allocation7 + $0x190] sm:$0xff]   ;;  %v330_v38 = vrot.slane %v3315_v48, 4 }
  0x8b   : > { %395 = vst [vmem:[#allocation2 + $0x2c] sm:$0x1] %v394_v37  ;;  %v234_v54 = vld [vmem:[#allocation2 + $0x38] sm:$0x1]  ;;  %v237_v55 = vld [vmem:[#allocation2 + $0x40] sm:$0x1]  ;;  %2660 = vmatpush3.bf16.msra.mxu1 %v2874_v49 }
  0x8c   : > { %2616 = vmatpush3.bf16.msra.mxu0 %v2865_v26  ;;  %v512_v60 = vor.u32 %v511_v47, %v508_v46  ;;  %v263_v61 = vld [vmem:[#allocation2 + $0x34] sm:$0x1]  ;;  %v235_v1 = vsel %vm3216_vm3, 0, %v234_v54  ;;  %v238_v12 = vsel %vm3216_vm3, 0, %v237_v55  ;;  %v266_v13 = vld [vmem:[#allocation2 + $0x3c] sm:$0x1] }
  0x8d   : > { %v2854_v44 = vld [vmem:[#allocation3 + $0x4c] ss:$36 sps:$4 sm:$0xff]   ;;  %2617 = vmatprep.subr.bf16.mxu0 %v2870_v29  ;;  %236 = vst [vmem:[#allocation2 + $0x38] sm:$0x1] %v235_v1  ;;  %239 = vst [vmem:[#allocation2 + $0x40] sm:$0x1] %v238_v12 }
  0x8e   : > { %1988 = vmatprep.mubr.bf16.mxu0 %v2854_v44  ;;  %v513_v7 = vrot.slane %v512_v60, 4  ;;  %v264_v17 = vsel %vm3221_vm4, 0, %v263_v61  ;;  %v281_v18 = vld [vmem:[%s3205_s4 + $0x18] sm:$0xf]  ;;  %v282_v19 = vld [vmem:[%s3205_s4 + $0x1c] sm:$0xf] }
  0x8f   : > { %1989 = vmatmul.mubr.bf16.gmra.mxu0 %v2857_v45  ;;  %265 = vst [vmem:[#allocation2 + $0x34] sm:$0x1] %v264_v17  ;;  %v267_v22 = vsel %vm3221_vm4, 0, %v266_v13  ;;  %v332_v26 = vshrl.u32 %v281_v18, 16  ;;  %v335_v27 = vshll.u32 %v281_v18, 16  ;;  %v340_v28 = vshrl.u32 %v282_v19, 16 }
  0x90   : > { %v587_v56 = vld [vmem:[#allocation2 + $0x28] sm:$0xe]  ;;  %v665_v63 = vld [vmem:[#allocation2 + $0x30] sm:$0xf]  ;;  %2618 = vmatpush3.bf16.msra.mxu0 %v2872_v43  ;;  %268 = vst [vmem:[#allocation2 + $0x3c] sm:$0x1] %v267_v22 }
  0x91   : > { %v664_v57 = vld [vmem:[#allocation2 + $0x28] sm:$0xf]  ;;  %v2394_v62 = vrot.slane %v587_v56, 9  ;;  %v586_v2 = vld [vmem:[#allocation2 + $0x24] sm:$0x1]  ;;  %v343_v32 = vshll.u32 %v282_v19, 16 }
  0x92   : > { %v419_v59 = vld [vmem:[#allocation2 + $0x28] sm:$0xf]  ;;  %672 = vst [vmem:[#allocation3 + $0x9c] sm:$0xf] %v664_v57  ;;  %v588_v3 = vld [vmem:[#allocation2 + $0x2c] sm:$0x1] }
  0x93   : > { %427 = vst [vmem:[#allocation3 + $0xb4] sm:$0xf] %v419_v59  ;;  %v440_v0 = vld [vmem:[#allocation2 + $0x28] sm:$0xf]  ;;  %673 = vst [vmem:[#allocation3 + $0xc0] sm:$0xf] %v665_v63 }
  0x94   : > { %v439_v4 = vld [vmem:[#allocation2 + $0x24] sm:$0x1]  ;;  %v630_v5 = vrot.slane %v586_v2, 5  ;;  %v634_v6 = vrot.slane %v588_v3, 5  ;;  %v441_v52 = vld [vmem:[#allocation2 + $0x2c] sm:$0x1] }
  0x95   : > { %v515_v8 = vshll.u32 %v439_v4, 16  ;;  %v520_v9 = vshrl.u32 %v440_v0, 16  ;;  %v523_v10 = vshll.u32 %v440_v0, 16  ;;  %v529_v11 = vshll.u32 %v441_v52, 16  ;;  %v2877_v29 = vld [vmem:[#allocation7 + $0x150] sm:$0xff]   ;;  %v2880_v42 = vld [vmem:[#allocation7 + $0x1c8] sm:$0xff]  }
  0x96   : > { %v631_v14 = vsel %vm3246_vm9, %v2393_v51, %v630_v5  ;;  %v635_v15 = vsel %vm3246_vm9, %v2394_v62, %v634_v6  ;;  %v334_v33 = vrot.slane %v332_v26, 7  ;;  %v3342_v34 = vrot.slane %v340_v28, 7  ;;  %v402_v35 = vld [vmem:[#allocation2 + $0x38] sm:$0xf]  ;;  %2619 = vmatprep.subr.bf16.mxu0 %v2877_v29  ;;  %v2879_v37 = vld [vmem:[#allocation7 + $0x110] sm:$0xff]   ;;  %2661 = vmatprep.subr.bf16.mxu1 %v2880_v42  ;;  %v2887_v2 = vld [vmem:[#allocation7 + $0x1c0] sm:$0xff]  }
  0x97   : > { %v517_v16 = vrot.slane %v515_v8, 5  ;;  %656 = vst [vmem:[#allocation3 + $0x98] sm:$0xf] %v631_v14  ;;  %657 = vst [vmem:[#allocation3 + $0xbc] sm:$0xf] %v635_v15  ;;  %v522_v20 = vrot.slane %v520_v9, 4  ;;  %2620 = vmatpush3.bf16.msra.mxu0 %v2879_v37 }
  0x98   : > { %v525_v21 = vrot.slane %v523_v10, 5  ;;  %v531_v31 = vrot.slane %v529_v11, 5  ;;  %v337_v39 = vor.u32 %v335_v27, %v334_v33  ;;  %v338_v40 = vrot.slane %v334_v33, 4  ;;  %v2881_v43 = vld [vmem:[#allocation7 + $0x188] sm:$0xff]   ;;  %v408_v45 = vld [vmem:[#allocation2 + $0x40] sm:$0xf] }
  0x99   : > { %v518_v24 = vsel %vm3277_vm12, %v513_v7, %v517_v16  ;;  %v345_v41 = vor.u32 %v343_v32, %v3342_v34  ;;  %v420_v46 = vld [vmem:[#allocation2 + $0x30] sm:$0xf]  ;;  %v399_v54 = vld [vmem:[#allocation2 + $0x34] sm:$0x1]  ;;  %v405_v55 = vld [vmem:[#allocation2 + $0x3c] sm:$0x1]  ;;  %2662 = vmatpush3.bf16.msra.mxu1 %v2881_v43 }
  0x9a   : > { %v526_v30 = vor.u32 %v525_v21, %v522_v20  ;;  %573 = vst [vmem:[#allocation3 + $0x94] sm:$0xf] %v518_v24  ;;  %v2861_v47 = vld [vmem:[#allocation3 + $0x9c] ss:$36 sps:$4 sm:$0xff]   ;;  %v403_v49 = vsel %vm3239_vm8, %v337_v39, %v402_v35  ;;  %428 = vst [vmem:[#allocation3 + $0xd8] sm:$0xf] %v420_v46  ;;  %v400_v56 = vsel %vm3216_vm3, %v330_v38, %v399_v54  ;;  %2663 = vmatprep.subr.bf16.mxu1 %v2887_v2 }
  0x9b   : > { %v409_v48 = vsel %vm3239_vm8, %v345_v41, %v408_v45  ;;  %404 = vst [vmem:[#allocation2 + $0x38] sm:$0xf] %v403_v49  ;;  %2061 = vmatprep.mubr.bf16.mxu1 %v2861_v47  ;;  %v406_v57 = vsel %vm3216_vm3, %v338_v40, %v405_v55  ;;  %v589_v59 = vld [vmem:[#allocation2 + $0x30] sm:$0xe]  ;;  %401 = vst [vmem:[#allocation2 + $0x34] sm:$0x1] %v400_v56 }
  0x9c   : > { %v527_v36 = vrot.slane %v526_v30, 4  ;;  %410 = vst [vmem:[#allocation2 + $0x40] sm:$0xf] %v409_v48  ;;  %v442_v60 = vld [vmem:[#allocation2 + $0x30] sm:$0xf]  ;;  %v2884_v62 = vld [vmem:[#allocation7 + $0x148] sm:$0xff]  }
  0x9d   : > { %407 = vst [vmem:[#allocation2 + $0x3c] sm:$0x1] %v406_v57  ;;  %v534_v53 = vshrl.u32 %v442_v60, 16  ;;  %v537_v61 = vshll.u32 %v442_v60, 16  ;;  %v2886_v63 = vld [vmem:[#allocation7 + $0x108] sm:$0xff]   ;;  %2621 = vmatprep.subr.bf16.mxu0 %v2884_v62  ;;  %v2888_v3 = vld [vmem:[#allocation7 + $0x180] sm:$0xff]  }
  0x9e   : > { %v532_v44 = vsel %vm3277_vm12, %v527_v36, %v531_v31  ;;  %v2864_v51 = vld [vmem:[#allocation3 + $0x98] ss:$36 sps:$4 sm:$0xff]   ;;  %2622 = vmatpush3.bf16.msra.mxu0 %v2886_v63  ;;  %v2871_v5 = vld [vmem:[#allocation3 + $0x90] ss:$36 sps:$4 sm:$0xff]   ;;  %v2395_v6 = vrot.slane %v589_v59, 9  ;;  %2664 = vmatpush3.bf16.msra.mxu1 %v2888_v3  ;;  %v2889_v26 = vld [vmem:[#allocation7 + $0x140] sm:$0xff]  }
  0x9f   : > { %574 = vst [vmem:[#allocation3 + $0xb8] sm:$0xf] %v532_v44  ;;  %2062 = vmatmul.mubr.bf16.gmra.mxu1 %v2864_v51  ;;  %v536_v0 = vrot.slane %v534_v53, 4  ;;  %v539_v1 = vrot.slane %v537_v61, 5  ;;  %v2893_v27 = vld [vmem:[#allocation7 + $0x100] sm:$0xff]   ;;  %2623 = vmatprep.subr.bf16.mxu0 %v2889_v26  ;;  %v3362_v49 = vld [vmem:[#allocation7 + $0x238] sm:$0xff]  }
  0xa0   : > { %v901_v32 = vld [vmem:[#allocation2 + $0x10] sm:$0xf]  ;;  %v902_v33 = vld [vmem:[#allocation2 + $0x18] sm:$0xf]  ;;  %v918_v38 = vld [vmem:[#allocation2 + $0x14] sm:$0x1]  ;;  %2725 = vmatprep.subr.bf16.mxu1 %v3362_v49 }
  0xa1   : > { %v540_v52 = vor.u32 %v539_v1, %v536_v0  ;;  %909 = vst [vmem:[#allocation3 + $0x18] sm:$0xf] %v901_v32  ;;  %910 = vst [vmem:[#allocation3 + $0x3c] sm:$0xf] %v902_v33  ;;  %v917_v37 = vld [vmem:[#allocation2 + $0x10] sm:$0xf] }
  0xa2   : > { %v591_v7 = vld [vmem:[#allocation2 + $0x38] sm:$0xe]  ;;  %v590_v14 = vld [vmem:[#allocation2 + $0x34] sm:$0x1]  ;;  %v920_v41 = vld [vmem:[#allocation2 + $0x1c] sm:$0x1]  ;;  %2624 = vmatpush3.bf16.msra.mxu0 %v2893_v27 }
  0xa3   : > { %v666_v8 = vld [vmem:[#allocation2 + $0x38] sm:$0xf]  ;;  %v667_v9 = vld [vmem:[#allocation2 + $0x40] sm:$0xf]  ;;  %v2396_v10 = vrot.slane %v591_v7, 9  ;;  %v541_v13 = vrot.slane %v540_v52, 4  ;;  %2701 = vmatprep.subr.bf16.mxu0 %v3362_v49 }
  0xa4   : > { %674 = vst [vmem:[#allocation3 + $0xe4] sm:$0xf] %v666_v8  ;;  %675 = vst [vmem:[#allocation3 + $0x108] sm:$0xf] %v667_v9  ;;  %v421_v11 = vld [vmem:[#allocation2 + $0x38] sm:$0xf] }
  0xa5   : > { %v444_v12 = vld [vmem:[#allocation2 + $0x38] sm:$0xf]  ;;  %v592_v15 = vld [vmem:[#allocation2 + $0x3c] sm:$0x1]  ;;  %429 = vst [vmem:[#allocation3 + $0xfc] sm:$0xf] %v421_v11 }
  0xa6   : > { %v2868_v4 = vld [vmem:[#allocation3 + $0x94] ss:$36 sps:$4 sm:$0xff]   ;;  %v443_v16 = vld [vmem:[#allocation2 + $0x34] sm:$0x1]  ;;  %v638_v17 = vrot.slane %v590_v14, 5  ;;  %v642_v18 = vrot.slane %v592_v15, 5 }
  0xa7   : > { %1996 = vmatprep.mubr.bf16.mxu0 %v2868_v4  ;;  %v445_v19 = vld [vmem:[#allocation2 + $0x3c] sm:$0x1]  ;;  %v543_v20 = vshll.u32 %v443_v16, 16  ;;  %v548_v21 = vshrl.u32 %v444_v12, 16  ;;  %v551_v22 = vshll.u32 %v444_v12, 16  ;;  %v934_v42 = vshrl.u32 %v917_v37, 16 }
  0xa8   : > { %1997 = vmatmul.mubr.bf16.gmra.mxu0 %v2871_v5  ;;  %v557_v24 = vshll.u32 %v445_v19, 16  ;;  %v639_v28 = vsel %vm3246_vm9, %v2395_v6, %v638_v17  ;;  %v643_v29 = vsel %vm3246_vm9, %v2396_v10, %v642_v18  ;;  %v919_v40 = vld [vmem:[#allocation2 + $0x18] sm:$0xf]  ;;  %v937_v43 = vshll.u32 %v917_v37, 16  ;;  %v676_v61 = vld [vmem:[#allocation2 + $0x8] sm:$0xf] }
  0xa9   : > { %v545_v30 = vrot.slane %v543_v20, 5  ;;  %v550_v31 = vrot.slane %v548_v21, 4  ;;  %658 = vst [vmem:[#allocation3 + $0xe0] sm:$0xf] %v639_v28  ;;  %659 = vst [vmem:[#allocation3 + $0x104] sm:$0xf] %v643_v29 }
  0xaa   : > { %v553_v35 = vrot.slane %v551_v22, 5  ;;  %v559_v36 = vrot.slane %v557_v24, 5  ;;  %v943_v45 = vshll.u32 %v918_v38, 16  ;;  %v948_v46 = vshrl.u32 %v919_v40, 16  ;;  %v677_v0 = vld [vmem:[#allocation2 + $0xc] sm:$0x1] }
  0xab   : > { %v546_v39 = vsel %vm3277_vm12, %v541_v13, %v545_v30  ;;  %v951_v47 = vshll.u32 %v919_v40, 16  ;;  %v936_v48 = vrot.slane %v934_v42, 4  ;;  %v939_v51 = vrot.slane %v937_v43, 5  ;;  %v678_v1 = vld [vmem:[#allocation2 + $0x10] sm:$0xf] }
  0xac   : > { %v554_v44 = vor.u32 %v553_v35, %v550_v31  ;;  %575 = vst [vmem:[#allocation3 + $0xdc] sm:$0xf] %v546_v39  ;;  %v957_v54 = vshll.u32 %v920_v41, 16  ;;  %v950_v56 = vrot.slane %v948_v46, 4  ;;  %v945_v60 = vrot.slane %v943_v45, 5 }
  0xad   : > { %v953_v57 = vrot.slane %v951_v47, 5  ;;  %v940_v59 = vor.u32 %v939_v51, %v936_v48  ;;  %v679_v2 = vld [vmem:[#allocation2 + $0x14] sm:$0x1]  ;;  %v693_v5 = vshrl.u32 %v676_v61, 16  ;;  %v696_v7 = vshll.u32 %v676_v61, 16  ;;  %v3380_v47 = vld [vmem:[#allocation7 + $0x230] sm:$0xff]  }
  0xae   : > { %v555_v55 = vrot.slane %v554_v44, 4  ;;  %v959_v53 = vrot.slane %v957_v54, 5  ;;  %v2875_v3 = vld [vmem:[#allocation3 + $0xe4] ss:$36 sps:$4 sm:$0xff]   ;;  %v702_v8 = vshll.u32 %v677_v0, 16  ;;  %v707_v9 = vshrl.u32 %v678_v1, 16 }
  0xaf   : > { %v954_v63 = vor.u32 %v953_v57, %v950_v56  ;;  %v941_v4 = vrot.slane %v940_v59, 4  ;;  %2069 = vmatprep.mubr.bf16.mxu1 %v2875_v3  ;;  %v695_v11 = vrot.slane %v693_v5, 4  ;;  %v710_v12 = vshll.u32 %v678_v1, 16  ;;  %v820_v14 = vld [vmem:[#allocation2 + $0x8] sm:$0xe] }
  0xb0   : > { %v560_v62 = vsel %vm3277_vm12, %v555_v55, %v559_v36  ;;  %v2878_v6 = vld [vmem:[#allocation3 + $0xe0] ss:$36 sps:$4 sm:$0xff]   ;;  %v716_v13 = vshll.u32 %v679_v2, 16  ;;  %v698_v16 = vrot.slane %v696_v7, 5  ;;  %v709_v17 = vrot.slane %v707_v9, 4 }
  0xb1   : > { %576 = vst [vmem:[#allocation3 + $0x100] sm:$0xf] %v560_v62  ;;  %v955_v52 = vrot.slane %v954_v63, 4  ;;  %v946_v10 = vsel %vm3277_vm12, %v941_v4, %v945_v60  ;;  %2070 = vmatmul.mubr.bf16.gmra.mxu1 %v2878_v6  ;;  %v821_v18 = vld [vmem:[#allocation2 + $0xc] sm:$0x1]  ;;  %v704_v19 = vrot.slane %v702_v8, 5 }
  0xb2   : > { %1053 = vst [vmem:[#allocation3 + $0x1c] sm:$0xf] %v946_v10  ;;  %v712_v20 = vrot.slane %v710_v12, 5  ;;  %v822_v21 = vld [vmem:[#allocation2 + $0x10] sm:$0xe]  ;;  %v699_v24 = vor.u32 %v698_v16, %v695_v11  ;;  %v2397_v26 = vrot.slane %v820_v14, 9 }
  0xb3   : > { %v960_v15 = vsel %vm3277_vm12, %v955_v52, %v959_v53  ;;  %v823_v22 = vld [vmem:[#allocation2 + $0x14] sm:$0x1]  ;;  %v854_v27 = vrot.slane %v821_v18, 5  ;;  %v2398_v28 = vrot.slane %v822_v21, 9  ;;  %v718_v30 = vrot.slane %v716_v13, 5  ;;  %v3384_v13 = vld [vmem:[#allocation7 + $0x228] sm:$0xff]  }
  0xb4   : > { %1054 = vst [vmem:[#allocation3 + $0x40] sm:$0xf] %v960_v15  ;;  %v713_v29 = vor.u32 %v712_v20, %v709_v17  ;;  %v858_v31 = vrot.slane %v823_v22, 5  ;;  %v903_v32 = vld [vmem:[#allocation2 + $0x20] sm:$0xf]  ;;  %v700_v36 = vrot.slane %v699_v24, 4 }
  0xb5   : > { %v2885_v35 = vld [vmem:[#allocation3 + $0xd8] ss:$36 sps:$4 sm:$0xff]   ;;  %v855_v37 = vsel %vm3246_vm9, %v2397_v26, %v854_v27  ;;  %911 = vst [vmem:[#allocation3 + $0x60] sm:$0xf] %v903_v32  ;;  %v921_v41 = vld [vmem:[#allocation2 + $0x20] sm:$0xf] }
  0xb6   : > { %v714_v38 = vrot.slane %v713_v29, 4  ;;  %v859_v39 = vsel %vm3246_vm9, %v2398_v28, %v858_v31  ;;  %892 = vst [vmem:[#allocation3 + $0x14] sm:$0xf] %v855_v37  ;;  %v904_v40 = vld [vmem:[#allocation2 + $0x28] sm:$0xf]  ;;  %v705_v42 = vsel %vm3277_vm12, %v700_v36, %v704_v19  ;;  %v962_v48 = vshrl.u32 %v921_v41, 16 }
  0xb7   : > { %893 = vst [vmem:[#allocation3 + $0x38] sm:$0xf] %v859_v39  ;;  %912 = vst [vmem:[#allocation3 + $0x84] sm:$0xf] %v904_v40  ;;  %v922_v43 = vld [vmem:[#allocation2 + $0x24] sm:$0x1] }
  0xb8   : > { %v2882_v33 = vld [vmem:[#allocation3 + $0xdc] ss:$36 sps:$4 sm:$0xff]   ;;  %v923_v44 = vld [vmem:[#allocation2 + $0x28] sm:$0xf]  ;;  %v719_v46 = vsel %vm3277_vm12, %v714_v38, %v718_v30  ;;  %812 = vst [vmem:[#allocation3 + $0x10] sm:$0xf] %v705_v42 }
  0xb9   : > { %2004 = vmatprep.mubr.bf16.mxu0 %v2882_v33  ;;  %v924_v45 = vld [vmem:[#allocation2 + $0x2c] sm:$0x1]  ;;  %v965_v51 = vshll.u32 %v921_v41, 16  ;;  %v971_v54 = vshll.u32 %v922_v43, 16  ;;  %813 = vst [vmem:[#allocation3 + $0x34] sm:$0xf] %v719_v46 }
  0xba   : > { %2005 = vmatmul.mubr.bf16.gmra.mxu0 %v2885_v35  ;;  %v2890_v55 = vld [vmem:[#allocation3 + $0x18] ss:$36 sps:$4 sm:$0xff]   ;;  %v976_v57 = vshrl.u32 %v923_v44, 16  ;;  %v964_v59 = vrot.slane %v962_v48, 4  ;;  %v979_v61 = vshll.u32 %v923_v44, 16  ;;  %v985_v63 = vshll.u32 %v924_v45, 16 }
  0xbb   : > { %v2892_v56 = vld [vmem:[#allocation3 + $0x1c] ss:$36 sps:$4 sm:$0xff]   ;;  %v967_v60 = vrot.slane %v965_v51, 5  ;;  %v973_v53 = vrot.slane %v971_v54, 5  ;;  %v680_v0 = vld [vmem:[#allocation2 + $0x18] sm:$0xf] }
  0xbc   : > { %2175 = vmatprep.mubr.bf16.mxu1 %v2892_v56  ;;  %v978_v62 = vrot.slane %v976_v57, 4  ;;  %v681_v1 = vld [vmem:[#allocation2 + $0x1c] sm:$0x1]  ;;  %v981_v3 = vrot.slane %v979_v61, 5  ;;  %v682_v4 = vld [vmem:[#allocation2 + $0x20] sm:$0xf] }
  0xbd   : > { %2176 = vmatmul.mubr.bf16.vlgmr.msra.gmra.mxu1 %v2890_v55  ;;  %v968_v2 = vor.u32 %v967_v60, %v964_v59  ;;  %v683_v5 = vld [vmem:[#allocation2 + $0x24] sm:$0x1]  ;;  %v721_v6 = vshrl.u32 %v680_v0, 16  ;;  %v987_v52 = vrot.slane %v985_v63, 5  ;;  %v724_v7 = vshll.u32 %v680_v0, 16  ;;  %v3392_v37 = vld [vmem:[#allocation7 + $0x220] sm:$0xff]  }
  0xbe   : > { %2733 = vmatpush3.bf16.msra.mxu1 %v3362_v49  ;;  %v730_v8 = vshll.u32 %v681_v1, 16  ;;  %v735_v9 = vshrl.u32 %v682_v4, 16  ;;  %v824_v10 = vld [vmem:[#allocation2 + $0x18] sm:$0xe]  ;;  %v982_v12 = vor.u32 %v981_v3, %v978_v62  ;;  %v738_v15 = vshll.u32 %v682_v4, 16  ;;  %v3397_v46 = vld [vmem:[#allocation7 + $0x218] sm:$0xff]  }
  0xbf   : > { %2726 = vmatprep.subr.bf16.mxu1 %v3380_v47  ;;  %v969_v11 = vrot.slane %v968_v2, 4  ;;  %v723_v14 = vrot.slane %v721_v6, 4  ;;  %v825_v16 = vld [vmem:[#allocation2 + $0x1c] sm:$0x1]  ;;  %v726_v17 = vrot.slane %v724_v7, 5  ;;  %v744_v20 = vshll.u32 %v683_v5, 16 }
  0xc0   : > { %v732_v18 = vrot.slane %v730_v8, 5  ;;  %v737_v19 = vrot.slane %v735_v9, 4  ;;  %v2895_v21 = vld [vmem:[#allocation3 + $0x10] ss:$36 sps:$4 sm:$0xff]   ;;  %v983_v26 = vrot.slane %v982_v12, 4  ;;  %v740_v28 = vrot.slane %v738_v15, 5 }
  0xc1   : > { %v2897_v22 = vld [vmem:[#allocation3 + $0x14] ss:$36 sps:$4 sm:$0xff]   ;;  %v974_v24 = vsel %vm3277_vm12, %v969_v11, %v973_v53  ;;  %v727_v27 = vor.u32 %v726_v17, %v723_v14  ;;  %v746_v29 = vrot.slane %v744_v20, 5  ;;  %v826_v30 = vld [vmem:[#allocation2 + $0x20] sm:$0xe]  ;;  %v2399_v33 = vrot.slane %v824_v10, 9 }
  0xc2   : > { %2734 = vmatpush3.bf16.msra.mxu1 %v3380_v47  ;;  %1055 = vst [vmem:[#allocation3 + $0x64] sm:$0xf] %v974_v24  ;;  %v827_v31 = vld [vmem:[#allocation2 + $0x24] sm:$0x1]  ;;  %2110 = vmatprep.mubr.bf16.mxu0 %v2897_v22  ;;  %v988_v32 = vsel %vm3277_vm12, %v983_v26, %v987_v52  ;;  %v862_v35 = vrot.slane %v825_v16, 5  ;;  %v2400_v36 = vrot.slane %v826_v30, 9  ;;  %v741_v39 = vor.u32 %v740_v28, %v737_v19 }
  0xc3   : > { %2727 = vmatprep.subr.bf16.mxu1 %v3384_v13  ;;  %2111 = vmatmul.mubr.bf16.vlgmr.msra.gmra.mxu0 %v2895_v21  ;;  %1056 = vst [vmem:[#allocation3 + $0x88] sm:$0xf] %v988_v32  ;;  %v728_v38 = vrot.slane %v727_v27, 4  ;;  %v866_v40 = vrot.slane %v827_v31, 5  ;;  %v905_v41 = vld [vmem:[#allocation2 + $0x30] sm:$0xf] }
  0xc4   : > { %2702 = vmatpush3.bf16.msra.mxu0 %v3362_v49  ;;  %v863_v42 = vsel %vm3246_vm9, %v2399_v33, %v862_v35  ;;  %v906_v43 = vld [vmem:[#allocation2 + $0x38] sm:$0xf]  ;;  %913 = vst [vmem:[#allocation3 + $0xa8] sm:$0xf] %v905_v41  ;;  %v925_v44 = vld [vmem:[#allocation2 + $0x30] sm:$0xf] }
  0xc5   : > { %v926_v45 = vld [vmem:[#allocation2 + $0x34] sm:$0x1]  ;;  %2703 = vmatprep.subr.bf16.mxu0 %v3380_v47  ;;  %v733_v48 = vsel %vm3277_vm12, %v728_v38, %v732_v18  ;;  %v742_v51 = vrot.slane %v741_v39, 4  ;;  %v867_v49 = vsel %vm3246_vm9, %v2400_v36, %v866_v40  ;;  %894 = vst [vmem:[#allocation3 + $0x5c] sm:$0xf] %v863_v42  ;;  %v990_v56 = vshrl.u32 %v925_v44, 16 }
  0xc6   : > { %2735 = vmatpush3.bf16.msra.mxu1 %v3384_v13  ;;  %914 = vst [vmem:[#allocation3 + $0xcc] sm:$0xf] %v906_v43  ;;  %v927_v54 = vld [vmem:[#allocation2 + $0x38] sm:$0xf]  ;;  %v928_v55 = vld [vmem:[#allocation2 + $0x3c] sm:$0x1] }
  0xc7   : > { %814 = vst [vmem:[#allocation3 + $0x58] sm:$0xf] %v733_v48  ;;  %895 = vst [vmem:[#allocation3 + $0x80] sm:$0xf] %v867_v49  ;;  %2728 = vmatprep.subr.bf16.mxu1 %v3392_v37  ;;  %v993_v57 = vshll.u32 %v925_v44, 16  ;;  %v999_v59 = vshll.u32 %v926_v45, 16  ;;  %v747_v61 = vsel %vm3277_vm12, %v742_v51, %v746_v29 }
  0xc8   : > { %v1004_v60 = vshrl.u32 %v927_v54, 16  ;;  %v1007_v53 = vshll.u32 %v927_v54, 16  ;;  %v992_v62 = vrot.slane %v990_v56, 4  ;;  %v1013_v63 = vshll.u32 %v928_v55, 16  ;;  %v684_v0 = vld [vmem:[#allocation2 + $0x28] sm:$0xf]  ;;  %2704 = vmatpush3.bf16.msra.mxu0 %v3380_v47 }
  0xc9   : > { %815 = vst [vmem:[#allocation3 + $0x7c] sm:$0xf] %v747_v61  ;;  %v995_v1 = vrot.slane %v993_v57, 5  ;;  %v1001_v2 = vrot.slane %v999_v59, 5  ;;  %2705 = vmatprep.subr.bf16.mxu0 %v3384_v13  ;;  %v685_v6 = vld [vmem:[#allocation2 + $0x2c] sm:$0x1] }
  0xca   : > { %v1006_v3 = vrot.slane %v1004_v60, 4  ;;  %v1009_v4 = vrot.slane %v1007_v53, 5  ;;  %2736 = vmatpush3.bf16.msra.mxu1 %v3392_v37  ;;  %v1015_v5 = vrot.slane %v1013_v63, 5  ;;  %v686_v52 = vld [vmem:[#allocation2 + $0x30] sm:$0xf]  ;;  %v749_v7 = vshrl.u32 %v684_v0, 16 }
  0xcb   : > { %v3411_v8 = vld [vmem:[#allocation7 + $0x210] sm:$0xff]   ;;  %v2899_v9 = vld [vmem:[#allocation3 + $0x64] ss:$36 sps:$4 sm:$0xff]   ;;  %v996_v11 = vor.u32 %v995_v1, %v992_v62  ;;  %2729 = vmatprep.subr.bf16.mxu1 %v3397_v46  ;;  %v752_v47 = vshll.u32 %v684_v0, 16  ;;  %v758_v16 = vshll.u32 %v685_v6, 16  ;;  %v763_v17 = vshrl.u32 %v686_v52, 16 }
  0xcc   : > { %v2901_v10 = vld [vmem:[#allocation3 + $0x60] ss:$36 sps:$4 sm:$0xff]   ;;  %v1010_v12 = vor.u32 %v1009_v4, %v1006_v3  ;;  %v751_v15 = vrot.slane %v749_v7, 4  ;;  %v766_v18 = vshll.u32 %v686_v52, 16  ;;  %2183 = vmatprep.mubr.bf16.mxu1 %v2899_v9  ;;  %2706 = vmatpush3.bf16.msra.mxu0 %v3384_v13  ;;  %v828_v24 = vld [vmem:[#allocation2 + $0x28] sm:$0xe] }
  0xcd   : > { %v687_v14 = vld [vmem:[#allocation2 + $0x34] sm:$0x1]  ;;  %v997_v19 = vrot.slane %v996_v11, 4  ;;  %v754_v21 = vrot.slane %v752_v47, 5  ;;  %2184 = vmatmul.mubr.bf16.gmra.mxu1 %v2901_v10  ;;  %2707 = vmatprep.subr.bf16.mxu0 %v3392_v37  ;;  %v760_v26 = vrot.slane %v758_v16, 5  ;;  %v765_v27 = vrot.slane %v763_v17, 4 }
  0xce   : > { %v1011_v20 = vrot.slane %v1010_v12, 4  ;;  %v772_v22 = vshll.u32 %v687_v14, 16  ;;  %v768_v28 = vrot.slane %v766_v18, 5  ;;  %v829_v29 = vld [vmem:[#allocation2 + $0x2c] sm:$0x1]  ;;  %2737 = vmatpush3.bf16.msra.mxu1 %v3397_v46  ;;  %v3421_v36 = vld [vmem:[#allocation7 + $0x208] sm:$0xff]  }
  0xcf   : > { %v1002_v30 = vsel %vm3277_vm12, %v997_v19, %v1001_v2  ;;  %v755_v13 = vor.u32 %v754_v21, %v751_v15  ;;  %v830_v33 = vld [vmem:[#allocation2 + $0x30] sm:$0xe]  ;;  %v831_v35 = vld [vmem:[#allocation2 + $0x34] sm:$0x1]  ;;  %v2401_v41 = vrot.slane %v828_v24, 9  ;;  %2730 = vmatprep.subr.bf16.mxu1 %v3411_v8  ;;  %v870_v43 = vrot.slane %v829_v29, 5 }
  0xd0   : > { %v1016_v31 = vsel %vm3277_vm12, %v1011_v20, %v1015_v5  ;;  %v774_v32 = vrot.slane %v772_v22, 5  ;;  %v2903_v38 = vld [vmem:[#allocation3 + $0x5c] ss:$36 sps:$4 sm:$0xff]   ;;  %1057 = vst [vmem:[#allocation3 + $0xac] sm:$0xf] %v1002_v30  ;;  %v769_v40 = vor.u32 %v768_v28, %v765_v27  ;;  %2708 = vmatpush3.bf16.msra.mxu0 %v3392_v37  ;;  %v2402_v44 = vrot.slane %v830_v33, 9 }
  0xd1   : > { %v2905_v39 = vld [vmem:[#allocation3 + $0x58] ss:$36 sps:$4 sm:$0xff]   ;;  %1058 = vst [vmem:[#allocation3 + $0xd0] sm:$0xf] %v1016_v31  ;;  %v756_v42 = vrot.slane %v755_v13, 4  ;;  %v874_v45 = vrot.slane %v831_v35, 5  ;;  %2118 = vmatprep.mubr.bf16.mxu0 %v2903_v38  ;;  %2709 = vmatprep.subr.bf16.mxu0 %v3397_v46  ;;  %v871_v54 = vsel %vm3246_vm9, %v2401_v41, %v870_v43 }
  0xd2   : > { %v770_v48 = vrot.slane %v769_v40, 4  ;;  %v240_v51 = vld [vmem:[#allocation2 + $0x48] sm:$0x1]  ;;  %2119 = vmatmul.mubr.bf16.gmra.mxu0 %v2905_v39  ;;  %2738 = vmatpush3.bf16.msra.mxu1 %v3411_v8  ;;  %v269_v56 = vld [vmem:[#allocation2 + $0x44] sm:$0x1]  ;;  %v3435_v59 = vld [vmem:[#allocation7 + $0x200] sm:$0xff]  }
  0xd3   : > { %v761_v49 = vsel %vm3277_vm12, %v756_v42, %v760_v26  ;;  %v875_v55 = vsel %vm3246_vm9, %v2402_v44, %v874_v45  ;;  %v241_v37 = vsel %vm3216_vm3, 0, %v240_v51  ;;  %v272_v57 = vld [vmem:[#allocation2 + $0x4c] sm:$0x1]  ;;  %896 = vst [vmem:[#allocation3 + $0xa4] sm:$0xf] %v871_v54  ;;  %v270_v53 = vsel %vm3221_vm4, 0, %v269_v56  ;;  %2731 = vmatprep.subr.bf16.mxu1 %v3421_v36 }
  0xd4   : > { %v775_v60 = vsel %vm3277_vm12, %v770_v48, %v774_v32  ;;  %816 = vst [vmem:[#allocation3 + $0xa0] sm:$0xf] %v761_v49  ;;  %897 = vst [vmem:[#allocation3 + $0xc8] sm:$0xf] %v875_v55  ;;  %v273_v61 = vsel %vm3221_vm4, 0, %v272_v57  ;;  %2710 = vmatpush3.bf16.msra.mxu0 %v3397_v46  ;;  %v346_v12 = vrot.slane %v3342_v34, 4 }
  0xd5   : > { %242 = vst [vmem:[#allocation2 + $0x48] sm:$0x1] %v241_v37  ;;  %v907_v62 = vld [vmem:[#allocation2 + $0x40] sm:$0xf]  ;;  %817 = vst [vmem:[#allocation3 + $0xc4] sm:$0xf] %v775_v60  ;;  %2711 = vmatprep.subr.bf16.mxu0 %v3411_v8 }
  0xd6   : > { %v929_v63 = vld [vmem:[#allocation2 + $0x40] sm:$0xf]  ;;  %271 = vst [vmem:[#allocation2 + $0x44] sm:$0x1] %v270_v53  ;;  %274 = vst [vmem:[#allocation2 + $0x4c] sm:$0x1] %v273_v61  ;;  %2739 = vmatpush3.bf16.msra.mxu1 %v3421_v36 }
  0xd7   : > { %915 = vst [vmem:[#allocation3 + $0xf0] sm:$0xf] %v907_v62  ;;  %v1018_v0 = vshrl.u32 %v929_v63, 16  ;;  %v1021_v1 = vshll.u32 %v929_v63, 16  ;;  %v688_v2 = vld [vmem:[#allocation2 + $0x38] sm:$0xf]  ;;  %2732 = vmatprep.subr.bf16.mxu1 %v3435_v59 }
  0xd8   : > { %v689_v3 = vld [vmem:[#allocation2 + $0x3c] sm:$0x1]  ;;  %v690_v4 = vld [vmem:[#allocation2 + $0x40] sm:$0xf]  ;;  %v777_v7 = vshrl.u32 %v688_v2, 16  ;;  %v780_v9 = vshll.u32 %v688_v2, 16  ;;  %2712 = vmatpush3.bf16.msra.mxu0 %v3411_v8 }
  0xd9   : > { %v2907_v5 = vld [vmem:[#allocation3 + $0xac] ss:$36 sps:$4 sm:$0xff]   ;;  %v1020_v25 = vrot.slane %v1018_v0, 4  ;;  %v1023_v6 = vrot.slane %v1021_v1, 5  ;;  %v786_v10 = vshll.u32 %v689_v3, 16  ;;  %v791_v46 = vshrl.u32 %v690_v4, 16  ;;  %2713 = vmatprep.subr.bf16.mxu0 %v3421_v36 }
  0xda   : > { %v2909_v52 = vld [vmem:[#allocation3 + $0xa8] ss:$36 sps:$4 sm:$0xff]   ;;  %2191 = vmatprep.mubr.bf16.mxu1 %v2907_v5  ;;  %v794_v11 = vshll.u32 %v690_v4, 16  ;;  %v779_v47 = vrot.slane %v777_v7, 4  ;;  %v782_v14 = vrot.slane %v780_v9, 5  ;;  %2740 = vmatpush3.bf16.msra.mxu1 %v3435_v59 }
  0xdb   : > { %2192 = vmatmul.mubr.bf16.gmra.mxu1 %v2909_v52  ;;  %v788_v15 = vrot.slane %v786_v10, 5  ;;  %v832_v16 = vld [vmem:[#allocation2 + $0x38] sm:$0xe]  ;;  %v833_v17 = vld [vmem:[#allocation2 + $0x3c] sm:$0x1]  ;;  %v793_v20 = vrot.slane %v791_v46, 4  ;;  %v1024_v8 = vor.u32 %v1023_v6, %v1020_v25 }
  0xdc   : > { %v908_v18 = vld [vmem:[#allocation2 + $0x48] sm:$0xf]  ;;  %v2911_v21 = vld [vmem:[#allocation3 + $0xa4] ss:$36 sps:$4 sm:$0xff]   ;;  %v783_v26 = vor.u32 %v782_v14, %v779_v47  ;;  %v3452_v34 = vld [vmem:[#allocation2 + $0x40] sm:$0xe]  ;;  %2714 = vmatpush3.bf16.msra.mxu0 %v3421_v36 }
  0xdd   : > { %v931_v19 = vld [vmem:[#allocation2 + $0x48] sm:$0xf]  ;;  %v2913_v22 = vld [vmem:[#allocation3 + $0xa0] ss:$36 sps:$4 sm:$0xff]   ;;  %916 = vst [vmem:[#allocation3 + $0x114] sm:$0xf] %v908_v18  ;;  %2126 = vmatprep.mubr.bf16.mxu0 %v2911_v21  ;;  %2715 = vmatprep.subr.bf16.mxu0 %v3435_v59 }
  0xde   : > { %v1032_v24 = vshrl.u32 %v931_v19, 16  ;;  %v411_v27 = vld [vmem:[#allocation2 + $0x44] sm:$0x1]  ;;  %v932_v28 = vld [vmem:[#allocation2 + $0x4c] sm:$0x1]  ;;  %v1035_v29 = vshll.u32 %v931_v19, 16  ;;  %2127 = vmatmul.mubr.bf16.gmra.mxu0 %v2913_v22 }
  0xdf   : > { %v796_v30 = vrot.slane %v794_v11, 5  ;;  %v412_v31 = vsel %vm3216_vm3, %v346_v12, %v411_v27  ;;  %v1041_v32 = vshll.u32 %v932_v28, 16  ;;  %v784_v33 = vrot.slane %v783_v26, 4  ;;  %v1069_v43 = vld [vmem:[#allocation2 + $0x30] sm:$0xe] }
  0xe0   : > { %v1034_v13 = vrot.slane %v1032_v24, 4  ;;  %413 = vst [vmem:[#allocation2 + $0x44] sm:$0x1] %v412_v31  ;;  %v1037_v35 = vrot.slane %v1035_v29, 5  ;;  %v2403_v39 = vrot.slane %v832_v16, 9  ;;  %v878_v40 = vrot.slane %v833_v17, 5  ;;  %2716 = vmatpush3.bf16.msra.mxu0 %v3435_v59 }
  0xe1   : > { %v797_v38 = vor.u32 %v796_v30, %v793_v20  ;;  %v3458_v41 = vrot.slane %v1024_v8, 4  ;;  %v1043_v42 = vrot.slane %v1041_v32, 5  ;;  %v789_v36 = vsel %vm3277_vm12, %v784_v33, %v788_v15  ;;  %v1070_v23 = vld [vmem:[#allocation2 + $0x34] sm:$0x1]  ;;  %v1071_v51 = vld [vmem:[#allocation2 + $0x38] sm:$0xe] }
  0xe2   : > { %v1038_v44 = vor.u32 %v1037_v35, %v1034_v13  ;;  %818 = vst [vmem:[#allocation3 + $0xe8] sm:$0xf] %v789_v36  ;;  %v879_v45 = vsel %vm3246_vm9, %v2403_v39, %v878_v40  ;;  %v2404_v48 = vrot.slane %v3452_v34, 9  ;;  %v1072_v49 = vld [vmem:[#allocation2 + $0x3c] sm:$0x1]  ;;  %v2409_v54 = vrot.slane %v1069_v43, 9 }
  0xe3   : > { %v798_v55 = vrot.slane %v797_v38, 4  ;;  %898 = vst [vmem:[#allocation3 + $0xec] sm:$0xf] %v879_v45  ;;  %v1111_v37 = vrot.slane %v1070_v23, 5  ;;  %v2410_v56 = vrot.slane %v1071_v51, 9  ;;  %v1115_v57 = vrot.slane %v1072_v49, 5 }
  0xe4   : > { %v1073_v60 = vld [vmem:[#allocation2 + $0x40] sm:$0xe]  ;;  %v1039_v53 = vrot.slane %v1038_v44, 4  ;;  %v1075_v61 = vld [vmem:[#allocation2 + $0x48] sm:$0xe] }
  0xe5   : > { %v1076_v62 = vld [vmem:[#allocation2 + $0x4c] sm:$0x1]  ;;  %v2411_v63 = vrot.slane %v1073_v60, 9  ;;  %v1112_v0 = vsel %vm3246_vm9, %v2409_v54, %v1111_v37  ;;  %v1116_v1 = vsel %vm3246_vm9, %v2410_v56, %v1115_v57  ;;  %v2412_v2 = vrot.slane %v1075_v61, 9  ;;  %v1061_v4 = vld [vmem:[#allocation2 + $0x10] sm:$0xe] }
  0xe6   : > { %v1123_v3 = vrot.slane %v1076_v62, 5  ;;  %v1062_v59 = vld [vmem:[#allocation2 + $0x14] sm:$0x1]  ;;  %v1044_v5 = vsel %vm3277_vm12, %v1039_v53, %v1043_v42  ;;  %1137 = vst [vmem:[#allocation3 + $0xb0] sm:$0xf] %v1112_v0  ;;  %v2405_v52 = vrot.slane %v1061_v4, 9 }
  0xe7   : > { %1138 = vst [vmem:[#allocation3 + $0xd4] sm:$0xf] %v1116_v1  ;;  %v1063_v25 = vld [vmem:[#allocation2 + $0x18] sm:$0xe]  ;;  %v1064_v6 = vld [vmem:[#allocation2 + $0x1c] sm:$0x1] }
  0xe8   : > { %v1095_v7 = vrot.slane %v1062_v59, 5  ;;  %v930_v9 = vld [vmem:[#allocation2 + $0x44] sm:$0x1]  ;;  %1060 = vst [vmem:[#allocation3 + $0x118] sm:$0xf] %v1044_v5  ;;  %v1124_v11 = vsel %vm3246_vm9, %v2412_v2, %v1123_v3  ;;  %v2406_v18 = vrot.slane %v1063_v25, 9 }
  0xe9   : > { %v691_v10 = vld [vmem:[#allocation2 + $0x44] sm:$0x1]  ;;  %v1027_v12 = vshll.u32 %v930_v9, 16  ;;  %1140 = vst [vmem:[#allocation3 + $0x11c] sm:$0xf] %v1124_v11  ;;  %v1099_v19 = vrot.slane %v1064_v6, 5 }
  0xea   : > { %v835_v46 = vld [vmem:[#allocation2 + $0x44] sm:$0x1]  ;;  %v800_v47 = vshll.u32 %v691_v10, 16  ;;  %v1096_v16 = vsel %vm3246_vm9, %v2405_v52, %v1095_v7  ;;  %v1065_v20 = vld [vmem:[#allocation2 + $0x20] sm:$0xe] }
  0xeb   : > { %v882_v14 = vrot.slane %v835_v46, 5  ;;  %v1074_v15 = vld [vmem:[#allocation2 + $0x44] sm:$0x1]  ;;  %1133 = vst [vmem:[#allocation3 + $0x20] sm:$0xf] %v1096_v16  ;;  %v1029_v21 = vrot.slane %v1027_v12, 5  ;;  %v1100_v27 = vsel %vm3246_vm9, %v2406_v18, %v1099_v19 }
  0xec   : > { %v1119_v17 = vrot.slane %v1074_v15, 5  ;;  %v802_v22 = vrot.slane %v800_v47, 5  ;;  %v1066_v24 = vld [vmem:[#allocation2 + $0x24] sm:$0x1]  ;;  %v2407_v26 = vrot.slane %v1065_v20, 9 }
  0xed   : > { %v883_v8 = vsel %vm3246_vm9, %v2404_v48, %v882_v14  ;;  %v1067_v28 = vld [vmem:[#allocation2 + $0x28] sm:$0xe]  ;;  %v1068_v29 = vld [vmem:[#allocation2 + $0x2c] sm:$0x1]  ;;  %v1103_v30 = vrot.slane %v1066_v24, 5  ;;  %v1030_v31 = vsel %vm3277_vm12, %v3458_v41, %v1029_v21 }
  0xee   : > { %899 = vst [vmem:[#allocation3 + $0x110] sm:$0xf] %v883_v8  ;;  %v1120_v34 = vsel %vm3246_vm9, %v2411_v63, %v1119_v17  ;;  %v803_v13 = vsel %vm3277_vm12, %v798_v55, %v802_v22  ;;  %1134 = vst [vmem:[#allocation3 + $0x44] sm:$0xf] %v1100_v27  ;;  %v2408_v32 = vrot.slane %v1067_v28, 9  ;;  %v1107_v33 = vrot.slane %v1068_v29, 5 }
  0xef   : > { %1139 = vst [vmem:[#allocation3 + $0xf8] sm:$0xf] %v1120_v34  ;;  %1059 = vst [vmem:[#allocation3 + $0xf4] sm:$0xf] %v1030_v31  ;;  %v1104_v35 = vsel %vm3246_vm9, %v2407_v26, %v1103_v30  ;;  %v2923_v39 = vld [vmem:[#allocation3 + $0xb0] ss:$36 sps:$4 sm:$0xff]  }
  0xf0   : > { %819 = vst [vmem:[#allocation3 + $0x10c] sm:$0xf] %v803_v13  ;;  %v1108_v38 = vsel %vm3246_vm9, %v2408_v32, %v1107_v33  ;;  %1135 = vst [vmem:[#allocation3 + $0x68] sm:$0xf] %v1104_v35  ;;  %v2917_v41 = vld [vmem:[#allocation3 + $0xf0] ss:$36 sps:$4 sm:$0xff]  }
  0xf1   : > { %1136 = vst [vmem:[#allocation3 + $0x8c] sm:$0xf] %v1108_v38  ;;  %v2413_v35 = vld [vmem:[%s3588_s2] ss:$0 sm:$0xff] }
  0xf5   : > { %v2919_v42 = vld [vmem:[#allocation3 + $0xec] ss:$36 sps:$4 sm:$0xff]   ;;  %v2925_v36 = vld [vmem:[#allocation3 + $0x20] ss:$36 sps:$4 sm:$0xff]  }
  0xf6   : > { %v2915_v40 = vld [vmem:[#allocation3 + $0xf4] ss:$36 sps:$4 sm:$0xff]   ;;  %2134 = vmatprep.mubr.bf16.mxu0 %v2919_v42 }
  0xf7   : > { %v2921_v50 = vld [vmem:[#allocation3 + $0xe8] ss:$36 sps:$4 sm:$0xff]   ;;  %2199 = vmatprep.mubr.bf16.mxu1 %v2915_v40  ;;  %v2924_v43 = vld [vmem:[#allocation3 + $0xf8] ss:$36 sps:$4 sm:$0xff]  }
  0xf8   : > { %2200 = vmatmul.mubr.bf16.gmra.mxu1 %v2917_v41  ;;  %2135 = vmatmul.mubr.bf16.gmra.mxu0 %v2921_v50  ;;  %v2926_v23 = vld [vmem:[#allocation3 + $0x68] ss:$36 sps:$4 sm:$0xff]  }
  0xf9   : > { %2721 = vmatprep.mubr.bf16.mxu1 %v2923_v39  ;;  %2717 = vmatprep.mubr.bf16.mxu0 %v2925_v36 }
 0x100   : > { %2722 = vmatmul.mubr.bf16.vlgmr.msra.gmra.mxu1 %v2924_v43  ;;  %2718 = vmatmul.mubr.bf16.vlgmr.msra.gmra.mxu0 %v2926_v23 }
 0x135   : > { %v3491_v58 = vpop.f32.mrf.mxu1 }
 0x137   : > { %v3493_v45 = vpop.f32.mrf.mxu1 }
 0x139   : > { %v2588_v51 = vpop.f32.mrf.mxu1 }
 0x13b   : > { %v2589_v54 = vpop.f32.mrf.mxu1 }
 0x13f   : > { %v2545_v44 = vpop.f32.mrf.mxu0 }
 0x141   : > { %v2546_v48 = vpop.f32.mrf.mxu0 }
 0x142   : > { %v2547_v32 = vadd.f32 %v2546_v48, %v2545_v44  ;;  %v2587_v44 = vadd.f32 %v3493_v45, %v3491_v58  ;;  %v2590_v48 = vadd.f32 %v2589_v54, %v2588_v51 }
 0x143   : > { %v2548_v49 = vpop.f32.mrf.mxu0 }
 0x144   : > { %v1983_v42 = vadd.f32 %v2547_v32, %v2413_v35 }
 0x145   : > { %v2549_v55 = vpop.f32.mrf.mxu0  ;;  %v2591_v37 = vpop.f32.mrf.mxu1 }
 0x146   : > { %v2550_v38 = vadd.f32 %v2549_v55, %v2548_v49 }
 0x147   : > { %v2592_v57 = vpop.f32.mrf.mxu1 }
 0x148   : > { %v1986_v43 = vadd.f32 %v2550_v38, %v2413_v35 }
 0x149   : > { %v3495_v53 = vpop.f32.mrf.mxu1 }
 0x14b   : > { %v3497_v62 = vpop.f32.mrf.mxu1 }
 0x14f   : > { %v2551_v56 = vpop.f32.mrf.mxu0 }
 0x151   : > { %v2552_v60 = vpop.f32.mrf.mxu0 }
 0x152   : > { %v2553_v39 = vadd.f32 %v2552_v60, %v2551_v56  ;;  %v2048_v60 = vadd.f32 %v2587_v44, %v1983_v42 }
 0x153   : > { %v2554_v61 = vpop.f32.mrf.mxu0 }
 0x154   : > { %v1991_v23 = vadd.f32 %v2553_v39, %v2413_v35 }
 0x155   : > { %v2555_v63 = vpop.f32.mrf.mxu0 }
 0x15f   : > { %v2597_v0 = vpop.f32.mrf.mxu1 }
 0x161   : > { %v2598_v2 = vpop.f32.mrf.mxu1 }
 0x162   : > { %v2599_v55 = vadd.f32 %v2598_v2, %v2597_v0 }
 0x163   : > { %v3499_v4 = vpop.f32.mrf.mxu1 }
 0x165   : > { %v2601_v5 = vpop.f32.mrf.mxu1 }
 0x166   : > { %v2602_v45 = vadd.f32 %v2601_v5, %v3499_v4 }
 0x168   : > { %v2557_v1 = vpop.f32.mrf.mxu0 }
 0x16a   : > { %v2558_v3 = vpop.f32.mrf.mxu0 }
 0x16b   : > { %v2559_v41 = vadd.f32 %v2558_v3, %v2557_v1 }
 0x16c   : > { %v2560_v59 = vpop.f32.mrf.mxu0 }
 0x16e   : > { %v2561_v25 = vpop.f32.mrf.mxu0 }
 0x171   : > { %v2603_v6 = vpop.f32.mrf.mxu1 }
 0x173   : > { %v2604_v7 = vpop.f32.mrf.mxu1 }
 0x174   : > { %v2605_v51 = vadd.f32 %v2604_v7, %v2603_v6 }
 0x175   : > { %v2606_v10 = vpop.f32.mrf.mxu1 }
 0x177   : > { %v2607_v11 = vpop.f32.mrf.mxu1 }
 0x17a   : > { %v2563_v52 = vpop.f32.mrf.mxu0 }
 0x17c   : > { %v2564_v9 = vpop.f32.mrf.mxu0 }
 0x17d   : > { %v3501_v47 = vpop.f32.mrf.mxu1  ;;  %v2565_v50 = vadd.f32 %v2564_v9, %v2563_v52  ;;  %v2596_v52 = vadd.f32 %v3497_v62, %v3495_v53  ;;  %v2051_v9 = vadd.f32 %v2590_v48, %v1986_v43 }
 0x17e   : > { %v2566_v46 = vpop.f32.mrf.mxu0 }
 0x17f   : > { %v3503_v15 = vpop.f32.mrf.mxu1  ;;  %v2007_v56 = vadd.f32 %v2565_v50, %v2413_v35 }
 0x180   : > { %v2567_v12 = vpop.f32.mrf.mxu0 }
 0x181   : > { %v3505_v17 = vpop.f32.mrf.mxu1  ;;  %v2072_v53 = vadd.f32 %v2605_v51, %v2007_v56 }
 0x182   : > { %3615 = vst [vmem:[#allocation13_spill] sm:$0xff] %v3505_v17  ;;  %v2556_v17 = vadd.f32 %v2555_v63, %v2554_v61  ;;  %v2608_v61 = vadd.f32 %v2607_v11, %v2606_v10 }
 0x183   : > { %v2625_v14 = vpop.f32.mrf.mxu0  ;;  %v3507_v19 = vpop.f32.mrf.mxu1 }
 0x184   : > { %3616 = vst [vmem:[#allocation14_spill] sm:$0xff] %v3507_v19  ;;  %v1994_v58 = vadd.f32 %v2556_v17, %v2413_v35 }
 0x185   : > { %v2626_v16 = vpop.f32.mrf.mxu0 }
 0x186   : > { %v2627_v49 = vadd.f32 %v2626_v16, %v2625_v14  ;;  %v2059_v17 = vadd.f32 %v2596_v52, %v1994_v58 }
 0x187   : > { %v2628_v18 = vpop.f32.mrf.mxu0 }
 0x188   : > { %v2113_v0 = vadd.f32 %v2627_v49, %v2048_v60 }
 0x189   : > { %v2629_v20 = vpop.f32.mrf.mxu0  ;;  %v3625_v49 = vld [vmem:[#allocation13_spill] sm:$0xff] }
 0x18a   : > { %v2630_v14 = vadd.f32 %v2629_v20, %v2628_v18 }
 0x18c   : > { %v2116_v18 = vadd.f32 %v2630_v14, %v2051_v9 }
 0x18d   : > { %v3509_v21 = vpop.f32.mrf.mxu1 }
 0x18e   : > { %3617 = vst [vmem:[#allocation15_spill] sm:$0xff] %v3509_v21  ;;  %v2568_v21 = vadd.f32 %v2567_v12, %v2566_v46  ;;  %v2667_v12 = vadd.f32 %v3503_v15, %v3501_v47 }
 0x18f   : > { %v2672_v8 = vpop.f32.mrf.mxu1 }
 0x190   : > { %v2010_v63 = vadd.f32 %v2568_v21, %v2413_v35 }
 0x191   : > { %v3511_v26 = vpop.f32.mrf.mxu1 }
 0x192   : > { %v2631_v22 = vpop.f32.mrf.mxu0  ;;  %3618 = vst [vmem:[#allocation16_spill] sm:$0xff] %v3511_v26  ;;  %v2562_v26 = vadd.f32 %v2561_v25, %v2560_v59 }
 0x193   : > { %v3513_v27 = vpop.f32.mrf.mxu1 }
 0x194   : > { %v2632_v24 = vpop.f32.mrf.mxu0  ;;  %3619 = vst [vmem:[#allocation17_spill] sm:$0xff] %v3513_v27  ;;  %v2593_v27 = vadd.f32 %v2592_v57, %v2591_v37  ;;  %v2002_v57 = vadd.f32 %v2562_v26, %v2413_v35  ;;  %v2075_v26 = vadd.f32 %v2608_v61, %v2010_v63 }
 0x195   : > { %v2633_v1 = vadd.f32 %v2632_v24, %v2631_v22  ;;  %v3621_v6 = vld [vmem:[#allocation15_spill] sm:$0xff] }
 0x196   : > { %v2634_v34 = vpop.f32.mrf.mxu0  ;;  %v2056_v32 = vadd.f32 %v2593_v27, %v1991_v23  ;;  %v2673_v7 = vadd.f32 %v2672_v8, %v3621_v6  ;;  %v2067_v24 = vadd.f32 %v2602_v45, %v2002_v57  ;;  %v2178_v27 = vadd.f32 %v2667_v12, %v2113_v0 }
 0x198   : > { %v2635_v28 = vpop.f32.mrf.mxu0  ;;  %v2121_v59 = vadd.f32 %v2633_v1, %v2056_v32 }
 0x199   : > { %v2636_v25 = vadd.f32 %v2635_v28, %v2634_v34 }
 0x19a   : > { %v2186_v15 = vadd.f32 %v2673_v7, %v2121_v59 }
 0x19b   : > { %v2677_v29 = vpop.f32.mrf.mxu1  ;;  %v2124_v28 = vadd.f32 %v2636_v25, %v2059_v17  ;;  %v3623_v20 = vld [vmem:[#allocation17_spill] sm:$0xff] }
 0x19d   : > { %v2678_v31 = vpop.f32.mrf.mxu1 }
 0x19e   : > { %v2637_v30 = vpop.f32.mrf.mxu0  ;;  %v2679_v22 = vadd.f32 %v2678_v31, %v2677_v29 }
 0x19f   : > { %v3515_v33 = vpop.f32.mrf.mxu1 }
 0x1a0   : > { %v2638_v13 = vpop.f32.mrf.mxu0  ;;  %3620 = vst [vmem:[#allocation18_spill] sm:$0xff] %v3515_v33  ;;  %v1999_v33 = vadd.f32 %v2559_v41, %v2413_v35 }
 0x1a1   : > { %v3520_v36 = vpop.f32.mrf.mxu1  ;;  %v2639_v38 = vadd.f32 %v2638_v13, %v2637_v30 }
 0x1a2   : > { %v2640_v40 = vpop.f32.mrf.mxu0  ;;  %v2064_v54 = vadd.f32 %v2599_v55, %v1999_v33  ;;  %v3626_v55 = vld [vmem:[#allocation14_spill] sm:$0xff] }
 0x1a3   : > { %v2670_v56 = vadd.f32 %v3626_v55, %v3625_v49 }
 0x1a4   : > { %v2641_v19 = vpop.f32.mrf.mxu0  ;;  %v2129_v16 = vadd.f32 %v2639_v38, %v2064_v54 }
 0x1a5   : > { %v2642_v4 = vadd.f32 %v2641_v19, %v2640_v40  ;;  %v3622_v19 = vld [vmem:[#allocation16_spill] sm:$0xff]  ;;  %v2181_v58 = vadd.f32 %v2670_v56, %v2116_v18 }
 0x1a6   : > { %v2676_v33 = vadd.f32 %v3623_v20, %v3622_v19  ;;  %v2194_v35 = vadd.f32 %v2679_v22, %v2129_v16 }
 0x1a7   : > { %v2132_v8 = vadd.f32 %v2642_v4, %v2067_v24  ;;  %v3624_v43 = vld [vmem:[#allocation18_spill] sm:$0xff] }
 0x1a8   : > { %v2682_v23 = vadd.f32 %v3520_v36, %v3624_v43  ;;  %v2189_v52 = vadd.f32 %v2676_v33, %v2124_v28 }
 0x1aa   : > { %v2197_v9 = vadd.f32 %v2682_v23, %v2132_v8 }
 0x1b8   : > { %v2683_v3 = vpop.f32.mrf.mxu1  ;;  %v2643_v39 = vpop.f32.mrf.mxu0 }
 0x1ba   : > { %v2684_v37 = vpop.f32.mrf.mxu1  ;;  %v2644_v2 = vpop.f32.mrf.mxu0 }
 0x1bb   : > { %v2645_v62 = vadd.f32 %v2644_v2, %v2643_v39  ;;  %v2685_v10 = vadd.f32 %v2684_v37, %v2683_v3 }
 0x1bc   : > { %v2686_v46 = vpop.f32.mrf.mxu1  ;;  %v2646_v5 = vpop.f32.mrf.mxu0 }
 0x1bd   : > { %v2137_v11 = vadd.f32 %v2645_v62, %v2072_v53 }
 0x1be   : > { %v2687_v21 = vpop.f32.mrf.mxu1  ;;  %v2647_v34 = vpop.f32.mrf.mxu0 }
 0x1bf   : > { %v2202_v30 = vadd.f32 %v2685_v10, %v2137_v11  ;;  %v2648_v47 = vadd.f32 %v2647_v34, %v2646_v5  ;;  %v2688_v41 = vadd.f32 %v2687_v21, %v2686_v46 }
 0x1c0   : > { %v2723_v13 = vpop.f32.mrf.mxu1  ;;  %v2719_v40 = vpop.f32.mrf.mxu0 }
 0x1c1   : > { %v2267_v42 = vadd.f32 %v2723_v13, %v2202_v30  ;;  %v2140_v29 = vadd.f32 %v2648_v47, %v2075_v26  ;;  %v2251_v50 = vadd.f32 %v2719_v40, %v2186_v15 }
 0x1c2   : > { %v2258_v31 = vpop.f32.mrf.mxu1  ;;  %v2242_v48 = vpop.f32.mrf.mxu0 }
 0x1c3   : > { %v2259_v44 = vadd.f32 %v2258_v31, %v2194_v35  ;;  %2279 = vst [vmem:[%s203_s29 + $0x30] sm:$0xff] %v2267_v42  ;;  %2275 = vst [vmem:[%s203_s29 + $0x10] sm:$0xff] %v2251_v50  ;;  %v2205_v60 = vadd.f32 %v2688_v41, %v2140_v29  ;;  %v2243_v3 = vadd.f32 %v2242_v48, %v2178_v27 }
 0x1c4   : > { %v2724_v1 = vpop.f32.mrf.mxu1  ;;  %v2720_v32 = vpop.f32.mrf.mxu0 }
 0x1c5   : > { %2277 = vst [vmem:[%s203_s29 + $0x20] sm:$0xff] %v2259_v44  ;;  %v2270_v36 = vadd.f32 %v2724_v1, %v2205_v60  ;;  %2273 = vst [vmem:[%s203_s29] sm:$0xff] %v2243_v3  ;;  %v2254_v39 = vadd.f32 %v2720_v32, %v2189_v52 }
 0x1c6   : > { %v2261_v38 = vpop.f32.mrf.mxu1  ;;  %v2245_v51 = vpop.f32.mrf.mxu0 }
 0x1c7   : > { %v2262_v45 = vadd.f32 %v2261_v38, %v2197_v9  ;;  %2280 = vst [vmem:[%s203_s29 + $0x38] sm:$0xff] %v2270_v36  ;;  %2276 = vst [vmem:[%s203_s29 + $0x18] sm:$0xff] %v2254_v39  ;;  %v2246_v54 = vadd.f32 %v2245_v51, %v2181_v58 }
 0x1c9   : > { %2278 = vst [vmem:[%s203_s29 + $0x28] sm:$0xff] %v2262_v45  ;;  %2274 = vst [vmem:[%s203_s29 + $0x8] sm:$0xff] %v2246_v54 }
 0x1ca   : > { %2994 = shalt.err (!%p2991_p0)
}
 0x1cb   : > { %s2995_s21 = scalar_lea.hbm %s3543_s16, 1024  ;;  %s2999_s4 = scalar_lea.hbm %s3589_s3, 2048 }
 0x1cc   : > { %p2996_p5 = scmp.ne.s32.totalorder %s3543_s16, %s2995_s21  ;;  %p3000_p4 = scmp.lt.s32.totalorder %s3543_s16, %s3589_s3 }
 0x1cd   : > { %p3001_p6 = scmp.lt.s32.totalorder %s2999_s4, %s2995_s21 }
 0x1ce   : > { %p2997_p2 = pnand %p2996_p5, %p3627_p11 }
 0x1cf   : > { %p3002_p8 = por %p3001_p6, %p3000_p4 }
 0x1d0   : > { %p2998_p1 = pneg %p2997_p2 }
 0x1d2   : > { %p3003_p3 = pnand %p3002_p8, %p2998_p1 }
 0x1d4   : > { %3006 = shalt.err (!%p3003_p3)
}
 0x1d5   : > { %s3057_s28 = smov 128   ;;  %s3058_s29 = smov 8  }
 0x1d6   : > { %2747 = dma.vmem_to_hbm [thread:$0]  (%p3627_p11), %s3538_s17, 1024, %s3543_s16, %s2282_s8, %s3057_s28, %s3057_s28, %s3058_s29  }
 0x1d7 PF: > { %s2310_s22 = sand.u32 1, %s3037_s12   ;;  %p3628_p7 = scmp.ne.s32.totalorder %s3595_s19, 0 }
 0x1d8   : > { %p3629_p9 = scmp.ge.s32.totalorder %s3049_s15, 2  ;;  %s2311_s23 = scalar_lea.sflag [#allocation6], %s2310_s22 }
 0x1da   : > { %p2758_p10 = pnand %p3629_p9, %p3628_p7 }
 0x1dc   : > { %p2759_p12 = pneg %p2758_p10 }
 0x1de   : > { %3032 = dma.done.wait (%p2759_p12), %s2311_s23, 1024  }
 0x1df   : > { %3034 = vsyncadd (%p2759_p12), %s2311_s23, 4294966272  ;;  %p17_p13 = scmp.ge.s32.totalorder %s3133_s24, 4   ;;  %s3630_s12 = smov %s3041_s13 }
 0x1e0   : > { %s3631_s13 = smov %s3045_s14  ;;  %s3632_s14 = smov %s3153_s5 }
 0x1e1   : > { %s3633_s15 = smov %s3133_s24  ;;  %19 = sbr.rel (!%p17_p13) target bundleno = 6 (0x6), region = 84 }
 0x1e6   :  { %2316 = vsyncpa [#allocation5], 1 }
 0x1e7   :  { %2318 = vsyncpa [#allocation5 + $0x1], 1 }
 0x1e8   :  { %2319 = vsyncpa [#allocation8], 1 }
 0x1e9   :  { %2320 = vsyncpa [#allocation6], 1 }
 0x1ea   :  { %2322 = vsyncpa [#allocation6 + $0x1], 1 }

</bundles_post_ra>
